<compile_context>
chip_gen: v7x
topology: tpu7x:2x2x1
jax: 0.10.0
libtpu: 0.0.40
codegen_flags: <defaults>
</compile_context>

<pallas_src>
import functools

import jax
import jax.numpy as jnp
import numpy as np
from jax.experimental import pallas as pl
from jax.experimental.pallas import tpu as pltpu

RELU6_MAX = 6.0
BN_EPS = 1e-5
LANE = 128


def fixed_padding(kernel_size, dilation):
    keff = kernel_size + (kernel_size - 1) * (dilation - 1)
    pad_total = keff - 1
    pad_beg = pad_total // 2
    pad_end = pad_total - pad_beg
    return pad_beg, pad_end


def fold_bn(gamma, beta, mean, var, eps=BN_EPS):
    scale = gamma / jnp.sqrt(var + eps)
    bias = beta - mean * scale
    return scale, bias


def _round_up(x, m):
    return (x + m - 1) // m * m


def _pad_last(a, n):
    pad = [(0, 0)] * (a.ndim - 1) + [(0, n - a.shape[-1])]
    return jnp.pad(a, pad)


def _pad2(a, rows, cols):
    return jnp.pad(a, ((0, rows - a.shape[0]), (0, cols - a.shape[1])))


def _scratch_dtype():
    # bf16 scratch only where the VPU has a bf16 path (v6e / v7x); keep f32
    # elsewhere (v5e has no bf16 VPU, so the per-window upcast is not free).
    kind = jax.devices()[0].device_kind.lower()
    if any(t in kind for t in ("v6", "v7", "tpu7")):
        return jnp.bfloat16
    return jnp.float32


def _vmem_limit_bytes():
    # Generation-derived VMEM budget (leave headroom for double buffers).
    try:
        cap = int(pltpu.get_tpu_info().vmem_capacity_bytes)
    except Exception:
        cap = 64 * 1024 * 1024
    return max(32 * 1024 * 1024, min(3 * cap // 4, 96 * 1024 * 1024))


# ----------------------------------------------------------------------------
# Pallas kernel: one grid step = one batch element (channels on lanes).
#   [1x1 expand (bf16 MXU) + bias + ReLU6] -> padded activation in VMEM scratch
#   -> depthwise 3x3 (3 band loads + XLU rolls) + bias + ReLU6
#   -> 1x1 project (bf16 MXU) + bias -> optional residual -> bf16 store.
# ----------------------------------------------------------------------------
def _inverted_residual_kernel(*refs, has_expand, use_res, stride, dilation,
                              H, W):
    if has_expand:
        (x_ref, w1_ref, b1_ref, dw_ref, b2_ref, w3_ref, b3_ref,
         o_ref, h_scr) = refs
    else:
        x_ref, dw_ref, b2_ref, w3_ref, b3_ref, o_ref, h_scr = refs

    d = dilation                          # fixed_padding(3, d) == (d, d)
    Hp, Wp8, Chp = h_scr.shape
    Ho = (H - 1) // stride + 1            # output rows
    Wd = W                                # dense output cols (stride-2 cols
                                          # are subsampled in the wrapper)
    scr_dtype = h_scr.dtype

    x2d = x_ref[0]                        # (H*W, Ci) bf16, natural channels

    # --- stage 1: 1x1 expansion (BN scale folded into w1) + bias + ReLU6 ----
    if has_expand:
        h = jnp.dot(x2d, w1_ref[...], preferred_element_type=jnp.float32)
        h = jnp.clip(h + b1_ref[...], 0.0, RELU6_MAX)           # (H*W, Chp)
        # Value of an expanded, spatially padded pixel:
        # conv1(0) = 0 -> + b1 -> ReLU6.
        border = jnp.clip(b1_ref[...], 0.0, RELU6_MAX)          # (1, Chp)
    else:
        ci = x2d.shape[-1]
        h = jnp.pad(x2d.astype(jnp.float32), ((0, 0), (0, Chp - ci)))
        border = jnp.zeros((1, Chp), jnp.float32)

    # --- materialize the spatially padded activation in the VMEM scratch ----
    # Rotated column layout: interior at cols [0, W) (aligned store), all pad
    # columns (right pad, alignment pad, left pad) at cols [W, Wp8).  The
    # left-pad tap is read back through pltpu.roll wrap-around.
    border3 = border.reshape(1, 1, Chp).astype(scr_dtype)
    h_scr[0:d, :, :] = jnp.broadcast_to(border3, (d, Wp8, Chp))
    h_scr[d + H:Hp, :, :] = jnp.broadcast_to(border3, (Hp - H - d, Wp8, Chp))
    h_scr[d:d + H, W:Wp8, :] = jnp.broadcast_to(border3, (H, Wp8 - W, Chp))
    # TODO(synk): for widths not a multiple of 8 this reshape relayouts; a
    #   lane-dense 2D scratch variant would remove it.
    h_scr[d:d + H, 0:W, :] = h.reshape(H, W, Chp).astype(scr_dtype)

    # --- stage 2: depthwise 3x3 (BN folded into dw) + bias + ReLU6 ----------
    # One full-width band load per kh; kw taps via XLU rolls.  Rolling by +d
    # wraps the left-pad columns (stored at the row end) to column 0, exactly
    # reproducing the padded-image window.
    acc = None
    for kh in range(3):
        if stride == 1:
            band = h_scr[kh * d:kh * d + Ho, :, :]
        else:   # strided read on the untiled leading (row) axis
            band = h_scr[pl.ds(kh * d, Ho, stride=stride), :, :]
        band = band.astype(jnp.float32)                       # (Ho, Wp8, Chp)
        for kw in range(3):
            shift = ((1 - kw) * d) % Wp8
            rolled = band if shift == 0 else pltpu.roll(band, shift=shift,
                                                        axis=1)
            tap = rolled[:, 0:Wd, :]                          # (Ho, Wd, Chp)
            k = kh * 3 + kw
            term = tap * dw_ref[k:k + 1, :]
            acc = term if acc is None else acc + term
    acc = jnp.clip(acc + b2_ref[...], 0.0, RELU6_MAX)         # (Ho, Wd, Chp)

    # --- stage 3: 1x1 projection (BN folded into w3) + bias, no ReLU --------
    out = jnp.dot(acc.reshape(Ho * Wd, Chp).astype(jnp.bfloat16), w3_ref[...],
                  preferred_element_type=jnp.float32)         # (Ho*Wd, oup)
    out = out + b3_ref[...]

    if use_res:
        # Re-read x right before the add to keep its live range short.
        out = out + x_ref[0].astype(jnp.float32)              # Ci == Co here

    o_ref[0] = out.astype(jnp.bfloat16)


# ----------------------------------------------------------------------------
# NHWC entry point (preferred when chaining blocks: bf16 NHWC hand-off,
# no per-block transposes, no channel padding of the activation stream).
# ----------------------------------------------------------------------------
def inverted_residual_nhwc(x_nhwc, params, *, stride, dilation, expand_ratio):
    assert stride in (1, 2)
    assert dilation >= 1
    B, H, W, inp = x_nhwc.shape
    has_expand = expand_ratio != 1
    hidden = int(round(inp * expand_ratio))
    oup = params["w3"].shape[1]
    use_res = (stride == 1) and (inp == oup)

    d = dilation
    pb, pe = fixed_padding(3, d)                  # == (d, d)
    Hp = H + pb + pe
    Wp8 = _round_up(W + pb + pe, 8)               # 8-aligned scratch width
    Ho = (H - 1) // stride + 1
    Wo = (W - 1) // stride + 1
    Wd = W                                        # dense cols computed in-kernel
    Chp = _round_up(hidden, LANE)                 # lane-dense hidden dim

    s2, b2 = fold_bn(*params["bn2"])
    s3, b3 = fold_bn(*params["bn3"])

    # Single activation input: flat (B, H*W, C) bf16, NATURAL channel count.
    x_flat = x_nhwc.reshape(B, H * W, inp).astype(jnp.bfloat16)

    def full(arr):
        nd = arr.ndim
        return pl.BlockSpec(arr.shape, lambda b: (0,) * nd)

    inputs = [x_flat]
    in_specs = [pl.BlockSpec((1, H * W, inp), lambda b: (b, 0, 0))]

    if has_expand:
        s1, b1 = fold_bn(*params["bn1"])
        w1 = _pad2(params["w1"].astype(jnp.float32) * s1[None, :], inp, Chp)
        b1p = _pad_last(b1.reshape(1, hidden), Chp).astype(jnp.float32)
        inputs += [w1.astype(jnp.bfloat16), b1p]
        in_specs += [full(w1), full(b1p)]

    dw = _pad2((params["dw"].astype(jnp.float32)
                * s2[None, None, :]).reshape(9, hidden), 9, Chp)
    b2p = _pad_last(b2.reshape(1, hidden), Chp).astype(jnp.float32)
    w3 = _pad2(params["w3"].astype(jnp.float32) * s3[None, :], Chp, oup)
    b3p = b3.reshape(1, oup).astype(jnp.float32)
    inputs += [dw.astype(jnp.float32), b2p, w3.astype(jnp.bfloat16), b3p]
    in_specs += [full(dw), full(b2p), full(w3), full(b3p)]

    kernel = functools.partial(
        _inverted_residual_kernel,
        has_expand=has_expand, use_res=use_res,
        stride=stride, dilation=d, H=H, W=W)

    out_flat = pl.pallas_call(
        kernel,
        out_shape=jax.ShapeDtypeStruct((B, Ho * Wd, oup), jnp.bfloat16),
        grid=(B,),
        in_specs=in_specs,
        out_specs=pl.BlockSpec((1, Ho * Wd, oup), lambda b: (b, 0, 0)),
        scratch_shapes=[pltpu.VMEM((Hp, Wp8, Chp), _scratch_dtype())],
        compiler_params=pltpu.CompilerParams(
            dimension_semantics=("parallel",),
            vmem_limit_bytes=_vmem_limit_bytes()),
    )(*inputs)

    out = out_flat.reshape(B, Ho, Wd, oup)
    if stride == 2:
        # TODO(synk): de-interleave even/odd columns inside the kernel so the
        # stride-2 projection/store does not also compute the odd columns.
        out = out[:, :, ::stride, :]
    # TODO(synk): for very large H*W*hidden (e.g. 112x112 with hidden>=256 on
    # v7x) add a spatial row-tile grid axis with a 2*dilation-row halo.
    return out                                    # (B, Ho, Wo, oup) bf16


# PyTorch-interface wrapper (NCHW in / NCHW out).
def inverted_residual_pallas(x_nchw, params, *, stride, dilation, expand_ratio):
    x_nhwc = jnp.transpose(x_nchw, (0, 2, 3, 1))
    out = inverted_residual_nhwc(x_nhwc, params, stride=stride,
                                 dilation=dilation, expand_ratio=expand_ratio)
    return jnp.transpose(out, (0, 3, 1, 2))


# ----------------------------------------------------------------------------
# Plain-JAX reference (same math, f32) for verification.
# ----------------------------------------------------------------------------
def inverted_residual_ref(x_nchw, params, *, stride, dilation, expand_ratio):
    B, inp, H, W = x_nchw.shape
    oup = params["w3"].shape[1]
    use_res = (stride == 1) and (inp == oup)

    pb, pe = fixed_padding(3, dilation)
    x = jnp.transpose(x_nchw, (0, 2, 3, 1)).astype(jnp.float32)
    xpad = jnp.pad(x, ((0, 0), (pb, pe), (pb, pe), (0, 0)))
    Ho = (H - 1) // stride + 1
    Wo = (W - 1) // stride + 1

    s2, b2 = fold_bn(*params["bn2"])
    s3, b3 = fold_bn(*params["bn3"])

    if expand_ratio != 1:
        s1, b1 = fold_bn(*params["bn1"])
        h = jnp.einsum("bhwc,cd->bhwd", xpad, params["w1"],
                       precision=jax.lax.Precision.HIGHEST)
        h = jnp.clip(h * s1 + b1, 0.0, RELU6_MAX)
        hidden = params["w1"].shape[1]
    else:
        h = xpad
        hidden = inp

    dw = params["dw"]                                       # (3, 3, hidden)
    acc = jnp.zeros((B, Ho, Wo, hidden), jnp.float32)
    for kh in range(3):
        for kw in range(3):
            r0, c0 = kh * dilation, kw * dilation
            win = h[:, r0:r0 + (Ho - 1) * stride + 1:stride,
                    c0:c0 + (Wo - 1) * stride + 1:stride, :]
            acc = acc + win * dw[kh, kw]
    acc = jnp.clip(acc * s2 + b2, 0.0, RELU6_MAX)

    out = jnp.einsum("bhwc,cd->bhwd", acc, params["w3"],
                     precision=jax.lax.Precision.HIGHEST) * s3 + b3
    if use_res:
        out = out + x
    return jnp.transpose(out, (0, 3, 1, 2))


if __name__ == "__main__":
    def make_params(key, inp, oup, expand_ratio):
        hidden = int(round(inp * expand_ratio))
        ks = jax.random.split(key, 12)

        def bn(k0, k1, k2, k3, c):
            return (jax.random.uniform(k0, (c,), jnp.float32, 0.5, 1.5),
                    0.1 * jax.random.normal(k1, (c,), jnp.float32),
                    0.1 * jax.random.normal(k2, (c,), jnp.float32),
                    jax.random.uniform(k3, (c,), jnp.float32, 0.5, 1.5))

        return {
            "w1": 0.1 * jax.random.normal(ks[0], (inp, hidden), jnp.float32),
            "bn1": bn(ks[1], ks[2], ks[3], ks[4], hidden),
            "dw": 0.1 * jax.random.normal(ks[5], (3, 3, hidden), jnp.float32),
            "bn2": bn(ks[6], ks[7], ks[8], ks[9], hidden),
            "w3": 0.1 * jax.random.normal(ks[10], (hidden, oup), jnp.float32),
            "bn3": bn(ks[11], ks[2], ks[3], ks[4], oup),
        }

    key = jax.random.PRNGKey(0)
    cases = [
        # residual path: expand_ratio=6, inp==oup, stride=1, dilation=1
        dict(inp=8, oup=8, H=16, W=16, stride=1, dilation=1, expand_ratio=6),
        # no-expand, no-residual path with dilation=2
        dict(inp=8, oup=16, H=16, W=16, stride=1, dilation=2, expand_ratio=1),
        # stride-2 downsampling path
        dict(inp=8, oup=16, H=16, W=16, stride=2, dilation=1, expand_ratio=6),
    ]
    k_all = jax.random.split(key, len(cases))

    B = 2
    for idx, cfg in enumerate(cases):
        kx, kp = jax.random.split(k_all[idx])
        x = jax.random.normal(kx, (B, cfg["inp"], cfg["H"], cfg["W"]),
                              jnp.float32)
        params = make_params(kp, cfg["inp"], cfg["oup"], cfg["expand_ratio"])

        out = inverted_residual_pallas(
            x, params, stride=cfg["stride"], dilation=cfg["dilation"],
            expand_ratio=cfg["expand_ratio"])
        out = jax.block_until_ready(out)

        ref = inverted_residual_ref(
            x, params, stride=cfg["stride"], dilation=cfg["dilation"],
            expand_ratio=cfg["expand_ratio"])

        # bf16 activations / matmuls / output (intentional deviation from the
        # f32 PyTorch reference) -> compare at 3e-2.
        np.testing.assert_allclose(np.asarray(out).astype(np.float32),
                                   np.asarray(ref).astype(np.float32),
                                   rtol=3e-2, atol=3e-2)

    print("KERNEL_OK")
</pallas_src>

<mosaic_0001>
module attributes {stable_mosaic.version = 11 : i64} {
  func.func @_inverted_residual_kernel(%arg0: i32, %arg1: memref<1x256x8xbf16, #tpu.memory_space<vmem>>, %arg2: memref<8x128xbf16, #tpu.memory_space<vmem>>, %arg3: memref<1x128xf32, #tpu.memory_space<vmem>>, %arg4: memref<9x128xf32, #tpu.memory_space<vmem>>, %arg5: memref<1x128xf32, #tpu.memory_space<vmem>>, %arg6: memref<128x8xbf16, #tpu.memory_space<vmem>>, %arg7: memref<1x8xf32, #tpu.memory_space<vmem>>, %arg8: memref<1x256x8xbf16, #tpu.memory_space<vmem>>, %arg9: memref<18x24x128xf32, #tpu.memory_space<vmem>>) attributes {dimension_semantics = [#tpu.dimension_semantics<parallel>], iteration_bounds = array<i64: 2>, scalar_prefetch = 0 : i64, scratch_operands = 1 : i64, tpu.core_type = #tpu.core_type<tc>, window_params = [{transform_indices = @transform_0, window_bounds = array<i64: 1, 256, 8>}, {pipeline_mode = #tpu.pipeline_mode<synchronous>, transform_indices = @transform_1, window_bounds = array<i64: 8, 128>}, {pipeline_mode = #tpu.pipeline_mode<synchronous>, transform_indices = @transform_2, window_bounds = array<i64: 1, 128>}, {pipeline_mode = #tpu.pipeline_mode<synchronous>, transform_indices = @transform_3, window_bounds = array<i64: 9, 128>}, {pipeline_mode = #tpu.pipeline_mode<synchronous>, transform_indices = @transform_4, window_bounds = array<i64: 1, 128>}, {pipeline_mode = #tpu.pipeline_mode<synchronous>, transform_indices = @transform_5, window_bounds = array<i64: 128, 8>}, {pipeline_mode = #tpu.pipeline_mode<synchronous>, transform_indices = @transform_6, window_bounds = array<i64: 1, 8>}, {transform_indices = @transform_7, window_bounds = array<i64: 1, 256, 8>}]} {
    %c0 = arith.constant 0 : index
    %c0_0 = arith.constant 0 : index
    %c0_1 = arith.constant 0 : index
    %0 = vector.load %arg1[%c0, %c0_0, %c0_1] : memref<1x256x8xbf16, #tpu.memory_space<vmem>>, vector<1x256x8xbf16>
    %1 = vector.shape_cast %0 : vector<1x256x8xbf16> to vector<256x8xbf16>
    %c0_2 = arith.constant 0 : index
    %c0_3 = arith.constant 0 : index
    %2 = vector.load %arg2[%c0_2, %c0_3] : memref<8x128xbf16, #tpu.memory_space<vmem>>, vector<8x128xbf16>
    %cst = arith.constant dense<0.000000e+00> : vector<256x128xf32>
    %3 = tpu.matmul %1, %2, %cst {dimension_numbers = #tpu.dot_dimension_numbers<[1], [0], [0], [1], [0, 0, 1, 1], [], []>} : vector<256x8xbf16>, vector<8x128xbf16>, vector<256x128xf32> -> vector<256x128xf32>
    %c0_4 = arith.constant 0 : index
    %c0_5 = arith.constant 0 : index
    %4 = vector.load %arg3[%c0_4, %c0_5] : memref<1x128xf32, #tpu.memory_space<vmem>>, vector<1x128xf32>
    %5 = vector.broadcast %4 : vector<1x128xf32> to vector<256x128xf32>
    %6 = arith.addf %3, %5 : vector<256x128xf32>
    %cst_6 = arith.constant 0.000000e+00 : f32
    %cst_7 = arith.constant 6.000000e+00 : f32
    %7 = vector.broadcast %cst_6 : f32 to vector<256x128xf32>
    %8 = arith.maximumf %7, %6 : vector<256x128xf32>
    %9 = vector.broadcast %cst_7 : f32 to vector<256x128xf32>
    %10 = arith.minimumf %9, %8 : vector<256x128xf32>
    %c0_8 = arith.constant 0 : index
    %c0_9 = arith.constant 0 : index
    %11 = vector.load %arg3[%c0_8, %c0_9] : memref<1x128xf32, #tpu.memory_space<vmem>>, vector<1x128xf32>
    %cst_10 = arith.constant 0.000000e+00 : f32
    %cst_11 = arith.constant 6.000000e+00 : f32
    %12 = vector.broadcast %cst_10 : f32 to vector<1x128xf32>
    %13 = arith.maximumf %12, %11 : vector<1x128xf32>
    %14 = vector.broadcast %cst_11 : f32 to vector<1x128xf32>
    %15 = arith.minimumf %14, %13 : vector<1x128xf32>
    %16 = vector.shape_cast %15 : vector<1x128xf32> to vector<1x1x128xf32>
    %17 = vector.shape_cast %16 : vector<1x1x128xf32> to vector<1x1x128xf32>
    %18 = vector.broadcast %17 : vector<1x1x128xf32> to vector<1x24x128xf32>
    %c0_12 = arith.constant 0 : index
    %c0_13 = arith.constant 0 : index
    %c0_14 = arith.constant 0 : index
    %19 = vector.load %arg9[%c0_12, %c0_13, %c0_14] : memref<18x24x128xf32, #tpu.memory_space<vmem>>, vector<1x24x128xf32>
    tpu.vector_store %arg9[%c0_12, %c0_13, %c0_14], %18 {strides = array<i32>} : memref<18x24x128xf32, #tpu.memory_space<vmem>>, vector<1x24x128xf32>,
    %20 = vector.shape_cast %16 : vector<1x1x128xf32> to vector<1x1x128xf32>
    %21 = vector.broadcast %20 : vector<1x1x128xf32> to vector<1x24x128xf32>
    %c17 = arith.constant 17 : index
    %c0_15 = arith.constant 0 : index
    %c0_16 = arith.constant 0 : index
    %22 = vector.load %arg9[%c17, %c0_15, %c0_16] : memref<18x24x128xf32, #tpu.memory_space<vmem>>, vector<1x24x128xf32>
    tpu.vector_store %arg9[%c17, %c0_15, %c0_16], %21 {strides = array<i32>} : memref<18x24x128xf32, #tpu.memory_space<vmem>>, vector<1x24x128xf32>,
    %23 = vector.shape_cast %16 : vector<1x1x128xf32> to vector<1x1x128xf32>
    %24 = vector.broadcast %23 : vector<1x1x128xf32> to vector<16x8x128xf32>
    %c1 = arith.constant 1 : index
    %c16 = arith.constant 16 : index
    %c0_17 = arith.constant 0 : index
    %25 = vector.load %arg9[%c1, %c16, %c0_17] : memref<18x24x128xf32, #tpu.memory_space<vmem>>, vector<16x8x128xf32>
    tpu.vector_store %arg9[%c1, %c16, %c0_17], %24 {strides = array<i32>} : memref<18x24x128xf32, #tpu.memory_space<vmem>>, vector<16x8x128xf32>,
    %26 = vector.shape_cast %10 : vector<256x128xf32> to vector<16x16x128xf32>
    %c1_18 = arith.constant 1 : index
    %c0_19 = arith.constant 0 : index
    %c0_20 = arith.constant 0 : index
    %27 = vector.load %arg9[%c1_18, %c0_19, %c0_20] : memref<18x24x128xf32, #tpu.memory_space<vmem>>, vector<16x16x128xf32>
    tpu.vector_store %arg9[%c1_18, %c0_19, %c0_20], %26 {strides = array<i32>} : memref<18x24x128xf32, #tpu.memory_space<vmem>>, vector<16x16x128xf32>,
    %c0_21 = arith.constant 0 : index
    %c0_22 = arith.constant 0 : index
    %c0_23 = arith.constant 0 : index
    %28 = vector.load %arg9[%c0_21, %c0_22, %c0_23] : memref<18x24x128xf32, #tpu.memory_space<vmem>>, vector<16x24x128xf32>
    %c1_i32 = arith.constant 1 : i32
    %29 = tpu.dynamic_rotate %28 by %c1_i32 dim 1 : vector<16x24x128xf32>, i32 -> vector<16x24x128xf32>
    %30 = vector.extract_strided_slice %29 {offsets = [0, 0, 0], sizes = [16, 16, 128], strides = [1, 1, 1]} : vector<16x24x128xf32> to vector<16x16x128xf32>
    %c0_24 = arith.constant 0 : index
    %c0_25 = arith.constant 0 : index
    %31 = vector.load %arg4[%c0_24, %c0_25] : memref<9x128xf32, #tpu.memory_space<vmem>>, vector<1x128xf32>
    %32 = vector.shape_cast %31 : vector<1x128xf32> to vector<1x1x128xf32>
    %33 = vector.broadcast %32 : vector<1x1x128xf32> to vector<16x16x128xf32>
    %34 = arith.mulf %30, %33 : vector<16x16x128xf32>
    %35 = vector.extract_strided_slice %28 {offsets = [0, 0, 0], sizes = [16, 16, 128], strides = [1, 1, 1]} : vector<16x24x128xf32> to vector<16x16x128xf32>
    %c1_26 = arith.constant 1 : index
    %c0_27 = arith.constant 0 : index
    %36 = vector.load %arg4[%c1_26, %c0_27] : memref<9x128xf32, #tpu.memory_space<vmem>>, vector<1x128xf32>
    %37 = vector.shape_cast %36 : vector<1x128xf32> to vector<1x1x128xf32>
    %38 = vector.broadcast %37 : vector<1x1x128xf32> to vector<16x16x128xf32>
    %39 = arith.mulf %35, %38 : vector<16x16x128xf32>
    %40 = arith.addf %34, %39 : vector<16x16x128xf32>
    %c23_i32 = arith.constant 23 : i32
    %41 = tpu.dynamic_rotate %28 by %c23_i32 dim 1 : vector<16x24x128xf32>, i32 -> vector<16x24x128xf32>
    %42 = vector.extract_strided_slice %41 {offsets = [0, 0, 0], sizes = [16, 16, 128], strides = [1, 1, 1]} : vector<16x24x128xf32> to vector<16x16x128xf32>
    %c2 = arith.constant 2 : index
    %c0_28 = arith.constant 0 : index
    %43 = vector.load %arg4[%c2, %c0_28] : memref<9x128xf32, #tpu.memory_space<vmem>>, vector<1x128xf32>
    %44 = vector.shape_cast %43 : vector<1x128xf32> to vector<1x1x128xf32>
    %45 = vector.broadcast %44 : vector<1x1x128xf32> to vector<16x16x128xf32>
    %46 = arith.mulf %42, %45 : vector<16x16x128xf32>
    %47 = arith.addf %40, %46 : vector<16x16x128xf32>
    %c1_29 = arith.constant 1 : index
    %c0_30 = arith.constant 0 : index
    %c0_31 = arith.constant 0 : index
    %48 = vector.load %arg9[%c1_29, %c0_30, %c0_31] : memref<18x24x128xf32, #tpu.memory_space<vmem>>, vector<16x24x128xf32>
    %c1_i32_32 = arith.constant 1 : i32
    %49 = tpu.dynamic_rotate %48 by %c1_i32_32 dim 1 : vector<16x24x128xf32>, i32 -> vector<16x24x128xf32>
    %50 = vector.extract_strided_slice %49 {offsets = [0, 0, 0], sizes = [16, 16, 128], strides = [1, 1, 1]} : vector<16x24x128xf32> to vector<16x16x128xf32>
    %c3 = arith.constant 3 : index
    %c0_33 = arith.constant 0 : index
    %51 = vector.load %arg4[%c3, %c0_33] : memref<9x128xf32, #tpu.memory_space<vmem>>, vector<1x128xf32>
    %52 = vector.shape_cast %51 : vector<1x128xf32> to vector<1x1x128xf32>
    %53 = vector.broadcast %52 : vector<1x1x128xf32> to vector<16x16x128xf32>
    %54 = arith.mulf %50, %53 : vector<16x16x128xf32>
    %55 = arith.addf %47, %54 : vector<16x16x128xf32>
    %56 = vector.extract_strided_slice %48 {offsets = [0, 0, 0], sizes = [16, 16, 128], strides = [1, 1, 1]} : vector<16x24x128xf32> to vector<16x16x128xf32>
    %c4 = arith.constant 4 : index
    %c0_34 = arith.constant 0 : index
    %57 = vector.load %arg4[%c4, %c0_34] : memref<9x128xf32, #tpu.memory_space<vmem>>, vector<1x128xf32>
    %58 = vector.shape_cast %57 : vector<1x128xf32> to vector<1x1x128xf32>
    %59 = vector.broadcast %58 : vector<1x1x128xf32> to vector<16x16x128xf32>
    %60 = arith.mulf %56, %59 : vector<16x16x128xf32>
    %61 = arith.addf %55, %60 : vector<16x16x128xf32>
    %c23_i32_35 = arith.constant 23 : i32
    %62 = tpu.dynamic_rotate %48 by %c23_i32_35 dim 1 : vector<16x24x128xf32>, i32 -> vector<16x24x128xf32>
    %63 = vector.extract_strided_slice %62 {offsets = [0, 0, 0], sizes = [16, 16, 128], strides = [1, 1, 1]} : vector<16x24x128xf32> to vector<16x16x128xf32>
    %c5 = arith.constant 5 : index
    %c0_36 = arith.constant 0 : index
    %64 = vector.load %arg4[%c5, %c0_36] : memref<9x128xf32, #tpu.memory_space<vmem>>, vector<1x128xf32>
    %65 = vector.shape_cast %64 : vector<1x128xf32> to vector<1x1x128xf32>
    %66 = vector.broadcast %65 : vector<1x1x128xf32> to vector<16x16x128xf32>
    %67 = arith.mulf %63, %66 : vector<16x16x128xf32>
    %68 = arith.addf %61, %67 : vector<16x16x128xf32>
    %c2_37 = arith.constant 2 : index
    %c0_38 = arith.constant 0 : index
    %c0_39 = arith.constant 0 : index
    %69 = vector.load %arg9[%c2_37, %c0_38, %c0_39] : memref<18x24x128xf32, #tpu.memory_space<vmem>>, vector<16x24x128xf32>
    %c1_i32_40 = arith.constant 1 : i32
    %70 = tpu.dynamic_rotate %69 by %c1_i32_40 dim 1 : vector<16x24x128xf32>, i32 -> vector<16x24x128xf32>
    %71 = vector.extract_strided_slice %70 {offsets = [0, 0, 0], sizes = [16, 16, 128], strides = [1, 1, 1]} : vector<16x24x128xf32> to vector<16x16x128xf32>
    %c6 = arith.constant 6 : index
    %c0_41 = arith.constant 0 : index
    %72 = vector.load %arg4[%c6, %c0_41] : memref<9x128xf32, #tpu.memory_space<vmem>>, vector<1x128xf32>
    %73 = vector.shape_cast %72 : vector<1x128xf32> to vector<1x1x128xf32>
    %74 = vector.broadcast %73 : vector<1x1x128xf32> to vector<16x16x128xf32>
    %75 = arith.mulf %71, %74 : vector<16x16x128xf32>
    %76 = arith.addf %68, %75 : vector<16x16x128xf32>
    %77 = vector.extract_strided_slice %69 {offsets = [0, 0, 0], sizes = [16, 16, 128], strides = [1, 1, 1]} : vector<16x24x128xf32> to vector<16x16x128xf32>
    %c7 = arith.constant 7 : index
    %c0_42 = arith.constant 0 : index
    %78 = vector.load %arg4[%c7, %c0_42] : memref<9x128xf32, #tpu.memory_space<vmem>>, vector<1x128xf32>
    %79 = vector.shape_cast %78 : vector<1x128xf32> to vector<1x1x128xf32>
    %80 = vector.broadcast %79 : vector<1x1x128xf32> to vector<16x16x128xf32>
    %81 = arith.mulf %77, %80 : vector<16x16x128xf32>
    %82 = arith.addf %76, %81 : vector<16x16x128xf32>
    %c23_i32_43 = arith.constant 23 : i32
    %83 = tpu.dynamic_rotate %69 by %c23_i32_43 dim 1 : vector<16x24x128xf32>, i32 -> vector<16x24x128xf32>
    %84 = vector.extract_strided_slice %83 {offsets = [0, 0, 0], sizes = [16, 16, 128], strides = [1, 1, 1]} : vector<16x24x128xf32> to vector<16x16x128xf32>
    %c8 = arith.constant 8 : index
    %c0_44 = arith.constant 0 : index
    %85 = vector.load %arg4[%c8, %c0_44] : memref<9x128xf32, #tpu.memory_space<vmem>>, vector<1x128xf32>
    %86 = vector.shape_cast %85 : vector<1x128xf32> to vector<1x1x128xf32>
    %87 = vector.broadcast %86 : vector<1x1x128xf32> to vector<16x16x128xf32>
    %88 = arith.mulf %84, %87 : vector<16x16x128xf32>
    %89 = arith.addf %82, %88 : vector<16x16x128xf32>
    %c0_45 = arith.constant 0 : index
    %c0_46 = arith.constant 0 : index
    %90 = vector.load %arg5[%c0_45, %c0_46] : memref<1x128xf32, #tpu.memory_space<vmem>>, vector<1x128xf32>
    %91 = vector.shape_cast %90 : vector<1x128xf32> to vector<1x1x128xf32>
    %92 = vector.broadcast %91 : vector<1x1x128xf32> to vector<16x16x128xf32>
    %93 = arith.addf %89, %92 : vector<16x16x128xf32>
    %cst_47 = arith.constant 0.000000e+00 : f32
    %cst_48 = arith.constant 6.000000e+00 : f32
    %94 = vector.broadcast %cst_47 : f32 to vector<16x16x128xf32>
    %95 = arith.maximumf %94, %93 : vector<16x16x128xf32>
    %96 = vector.broadcast %cst_48 : f32 to vector<16x16x128xf32>
    %97 = arith.minimumf %96, %95 : vector<16x16x128xf32>
    %98 = vector.shape_cast %97 : vector<16x16x128xf32> to vector<256x128xf32>
    %99 = arith.truncf %98 : vector<256x128xf32> to vector<256x128xbf16>
    %c0_49 = arith.constant 0 : index
    %c0_50 = arith.constant 0 : index
    %100 = vector.load %arg6[%c0_49, %c0_50] : memref<128x8xbf16, #tpu.memory_space<vmem>>, vector<128x8xbf16>
    %cst_51 = arith.constant dense<0.000000e+00> : vector<256x8xf32>
    %101 = tpu.matmul %99, %100, %cst_51 {dimension_numbers = #tpu.dot_dimension_numbers<[1], [0], [0], [1], [0, 0, 1, 1], [], []>} : vector<256x128xbf16>, vector<128x8xbf16>, vector<256x8xf32> -> vector<256x8xf32>
    %c0_52 = arith.constant 0 : index
    %c0_53 = arith.constant 0 : index
    %102 = vector.load %arg7[%c0_52, %c0_53] : memref<1x8xf32, #tpu.memory_space<vmem>>, vector<1x8xf32>
    %103 = vector.broadcast %102 : vector<1x8xf32> to vector<256x8xf32>
    %104 = arith.addf %101, %103 : vector<256x8xf32>
    %c0_54 = arith.constant 0 : index
    %c0_55 = arith.constant 0 : index
    %c0_56 = arith.constant 0 : index
    %105 = vector.load %arg1[%c0_54, %c0_55, %c0_56] : memref<1x256x8xbf16, #tpu.memory_space<vmem>>, vector<1x256x8xbf16>
    %106 = vector.shape_cast %105 : vector<1x256x8xbf16> to vector<256x8xbf16>
    %107 = arith.extf %106 : vector<256x8xbf16> to vector<256x8xf32>
    %108 = arith.addf %104, %107 : vector<256x8xf32>
    %109 = arith.truncf %108 : vector<256x8xf32> to vector<256x8xbf16>
    %c0_57 = arith.constant 0 : index
    %c0_58 = arith.constant 0 : index
    %c0_59 = arith.constant 0 : index
    %110 = vector.load %arg8[%c0_57, %c0_58, %c0_59] : memref<1x256x8xbf16, #tpu.memory_space<vmem>>, vector<1x256x8xbf16>
    %111 = vector.shape_cast %110 : vector<1x256x8xbf16> to vector<256x8xbf16>
    %112 = vector.shape_cast %109 : vector<256x8xbf16> to vector<1x256x8xbf16>
    tpu.vector_store %arg8[%c0_57, %c0_58, %c0_59], %112 {strides = array<i32>} : memref<1x256x8xbf16, #tpu.memory_space<vmem>>, vector<1x256x8xbf16>,
    return
  }
  func.func @transform_0(%arg0: i32) -> (i32, i32, i32) {
    %c0_i32 = arith.constant 0 : i32
    %c0_i32_0 = arith.constant 0 : i32
    %c0_i32_1 = arith.constant 0 : i32
    return %arg0, %c0_i32, %c0_i32_0 : i32, i32, i32
  }
  func.func @transform_1(%arg0: i32) -> (i32, i32) {
    %c0_i32 = arith.constant 0 : i32
    %c0_i32_0 = arith.constant 0 : i32
    %c0_i32_1 = arith.constant 0 : i32
    return %c0_i32, %c0_i32_0 : i32, i32
  }
  func.func @transform_2(%arg0: i32) -> (i32, i32) {
    %c0_i32 = arith.constant 0 : i32
    %c0_i32_0 = arith.constant 0 : i32
    %c0_i32_1 = arith.constant 0 : i32
    return %c0_i32, %c0_i32_0 : i32, i32
  }
  func.func @transform_3(%arg0: i32) -> (i32, i32) {
    %c0_i32 = arith.constant 0 : i32
    %c0_i32_0 = arith.constant 0 : i32
    %c0_i32_1 = arith.constant 0 : i32
    return %c0_i32, %c0_i32_0 : i32, i32
  }
  func.func @transform_4(%arg0: i32) -> (i32, i32) {
    %c0_i32 = arith.constant 0 : i32
    %c0_i32_0 = arith.constant 0 : i32
    %c0_i32_1 = arith.constant 0 : i32
    return %c0_i32, %c0_i32_0 : i32, i32
  }
  func.func @transform_5(%arg0: i32) -> (i32, i32) {
    %c0_i32 = arith.constant 0 : i32
    %c0_i32_0 = arith.constant 0 : i32
    %c0_i32_1 = arith.constant 0 : i32
    return %c0_i32, %c0_i32_0 : i32, i32
  }
  func.func @transform_6(%arg0: i32) -> (i32, i32) {
    %c0_i32 = arith.constant 0 : i32
    %c0_i32_0 = arith.constant 0 : i32
    %c0_i32_1 = arith.constant 0 : i32
    return %c0_i32, %c0_i32_0 : i32, i32
  }
  func.func @transform_7(%arg0: i32) -> (i32, i32, i32) {
    %c0_i32 = arith.constant 0 : i32
    %c0_i32_0 = arith.constant 0 : i32
    %c0_i32_1 = arith.constant 0 : i32
    return %arg0, %c0_i32, %c0_i32_0 : i32, i32, i32
  }
}

</mosaic_0001>

<bundles_post_ra>
// kernel: tpu_custom_call.1
= control target key start
LH: loop header
LB: loop body
LE: loop exit
PB: predicated region body
PF: predicated region fallthrough
CT: control target
= control target key end

     0   :  { %s3060_s24 = smov 0   ;;  %s4680_s0 = inlined_call_operand.vmem [shape: bf16[2,256,8], index: 0, kind: input, shape index: {}]   ;;  %s4681_s1 = inlined_call_operand.vmem [shape: bf16[8,128], index: 1, kind: input, shape index: {}]   ;;  %s4682_s2 = inlined_call_operand.vmem [shape: f32[1,128], index: 2, kind: input, shape index: {}]   ;;  %s4683_s3 = inlined_call_operand.vmem [shape: f32[9,128], index: 3, kind: input, shape index: {}]   ;;  %s4684_s4 = inlined_call_operand.vmem [shape: f32[1,128], index: 4, kind: input, shape index: {}]   ;;  %s4685_s5 = inlined_call_operand.vmem [shape: bf16[128,8], index: 5, kind: input, shape index: {}]   ;;  %s4686_s6 = inlined_call_operand.vmem [shape: f32[1,8], index: 6, kind: input, shape index: {}]   ;;  %s4687_s7 = inlined_call_operand.vmem [shape: bf16[2,256,8], index: 7, kind: output, shape index: {}]  }
   0x1 LB: > { %s2623_s25 = sadd.s32 4294967295, %s3018_s24   ;;  %p2627_p0 = scmp.ge.s32.totalorder %s3018_s24, 1  ;;  %s3018_s24 = sphi %s3060_s24, %s17_s24  }
   0x2   : > { %p237_p1 = scmp.lt.s32.totalorder %s3018_s24, 3 }
   0x4   : > { %p238_p2 = pnand %p2627_p0, %p237_p1 }
   0x6   : > { %241 = sbr.rel (%p238_p2) target bundleno = 691 (0x2b3), region = 48 }
   0xd   : > { %v312_v0 = vld [vmem:[%s4681_s1] sm:$0xf]  ;;  %vm449_vm0 = vcmask 1043456   ;;  %p269_p3 = scmp.lt.s32.totalorder %s2623_s25, 1  ;;  %vm400_vm1 = vcmask 64512   ;;  %v2995_v19 = vld [vmem:[%s4685_s5 + $0x8] sm:$0xff]   ;;  %v315_v27 = vlaneseq }
   0xe   : > { %2969 = vmatprep.subr.msk.bf16.mxu0 %vm449_vm0, %v312_v0  ;;  %v451_v1 = vsel %vm449_vm0, %v312_v0, 0  ;;  %v2994_v18 = vld [vmem:[%s4685_s5] sm:$0xff]   ;;  %v2996_v20 = vld [vmem:[%s4685_s5 + $0x10] sm:$0xff]   ;;  %v2997_v21 = vld [vmem:[%s4685_s5 + $0x18] sm:$0xff]   ;;  %vm2535_vm4 = vcmask 60416  }
   0xf   : > { %2872 = vmatpush3.bf16.msra.mxu0 %v451_v1  ;;  %s4997_s25 = smov (!%p269_p3, %s2623_s25), 1  ;;  %2953 = vmatprep.subr.bf16.mxu1 %v2994_v18  ;;  %v2998_v22 = vld [vmem:[%s4685_s5 + $0x20] sm:$0xff]   ;;  %v2999_v23 = vld [vmem:[%s4685_s5 + $0x28] sm:$0xff]   ;;  %v3000_v24 = vld [vmem:[%s4685_s5 + $0x30] sm:$0xff]   ;;  %v3140_v29 = vshrl.u32 %v315_v27, 7 }
  0x10   : > { %s2717_s28 = sshll.u32 %s4997_s25, 7  ;;  %2905 = vmatprep.subr.bf16.mxu0 %v2994_v18  ;;  %2961 = vmatpush3.bf16.msra.mxu1 %v2994_v18  ;;  %v3001_v25 = vld [vmem:[%s4685_s5 + $0x38] sm:$0xff]   ;;  %v313_v26 = vld [vmem:[%s4682_s2] sm:$0x1]  ;;  %v3156_v35 = vld [vmem:[%s4683_s3 + $0x1] ss:$0 sm:$0xff] }
  0x11   : > { %s3079_s8 = scalar_lea.vmem %s4680_s0, %s2717_s28  ;;  %2954 = vmatprep.subr.bf16.mxu1 %v2995_v19  ;;  %v678_v28 = vmax.f32 %v313_v26, 0.0  ;;  %v317_v31 = vsub.s32 0, %v3140_v29  ;;  %v3151_v34 = vld [vmem:[%s4683_s3] ss:$0 sm:$0xff]  ;;  %v3170_v41 = vld [vmem:[%s4683_s3 + $0x2] ss:$0 sm:$0xff]  ;;  %s4568_s14 = scalar_lea.vmem %s4687_s7, %s2717_s28 }
  0x12   : > { %v2978_v2 = vld [vmem:[%s3079_s8] sm:$0xff]   ;;  %v2979_v3 = vld [vmem:[%s3079_s8 + $0x8] sm:$0xff]   ;;  %v2980_v4 = vld [vmem:[%s3079_s8 + $0x10] sm:$0xff]   ;;  %vm840_vm2 = vcmp.lt.s32.totalorder %v3140_v29, 1  ;;  %vm1027_vm3 = vcmp.lt.s32.totalorder %v3140_v29, 7 }
  0x13   : > { %2873 = vmatprep.mubr.msk.bf16.mxu0 %vm400_vm1, %v2978_v2  ;;  %v2981_v5 = vld [vmem:[%s3079_s8 + $0x18] sm:$0xff]   ;;  %v2982_v6 = vld [vmem:[%s3079_s8 + $0x20] sm:$0xff]   ;;  %v2983_v7 = vld [vmem:[%s3079_s8 + $0x28] sm:$0xff]   ;;  %v679_v30 = vmin.f32 %v678_v28, 6.0  ;;  %v3158_v36 = vrot.slane %v313_v26, %v317_v31 }
  0x14   : > { %2874 = vmatmul.mubr.msk.bf16.vlgmr.msra.gmra.mrb[0].mxu0 %vm400_vm1, %v2979_v3  ;;  %v2984_v8 = vld [vmem:[%s3079_s8 + $0x30] sm:$0xff]   ;;  %v2985_v9 = vld [vmem:[%s3079_s8 + $0x38] sm:$0xff]   ;;  %v2986_v10 = vld [vmem:[%s3079_s8 + $0x40] sm:$0xff]   ;;  %2962 = vmatpush3.bf16.msra.mxu1 %v2995_v19 }
  0x15   : > { %2877 = vmatprep.mubr.msk.bf16.mxu0 %vm400_vm1, %v2980_v4  ;;  %v2987_v11 = vld [vmem:[%s3079_s8 + $0x48] sm:$0xff]   ;;  %v2988_v12 = vld [vmem:[%s3079_s8 + $0x50] sm:$0xff]   ;;  %v2989_v13 = vld [vmem:[%s3079_s8 + $0x58] sm:$0xff]   ;;  %2906 = vmatpush3.bf16.msra.mxu0 %v2994_v18  ;;  %v3143_v32 = vrot.slane %v679_v30, %v317_v31 }
  0x16   : > { %v2990_v14 = vld [vmem:[%s3079_s8 + $0x60] sm:$0xff]   ;;  %v2991_v15 = vld [vmem:[%s3079_s8 + $0x68] sm:$0xff]   ;;  %v2992_v16 = vld [vmem:[%s3079_s8 + $0x70] sm:$0xff]   ;;  %2907 = vmatprep.subr.bf16.mxu0 %v2995_v19  ;;  %2955 = vmatprep.subr.bf16.mxu1 %v2996_v20 }
  0x17   : > { %v2993_v17 = vld [vmem:[%s3079_s8 + $0x78] sm:$0xff]   ;;  %4742 = vst [vmem:[#allocation3_spill] sm:$0xff] %v3143_v32  ;;  %v3146_v33 = vrot.slane %v3143_v32, 7  ;;  %v915_v38 = vmul.f32 %v3156_v35, %v3143_v32  ;;  %v3165_v39 = vrot.slane %v3143_v32, 1  ;;  %v3183_v54 = vld [vmem:[%s4683_s3 + $0x4] ss:$0 sm:$0xff] }
  0x18   : > { %2963 = vmatpush3.bf16.msra.mxu1 %v2996_v20  ;;  %v3194_v62 = vld [vmem:[%s4683_s3 + $0x3] ss:$0 sm:$0xff] }
  0x19   : > { %2908 = vmatpush3.bf16.msra.mxu0 %v2995_v19  ;;  %2956 = vmatprep.subr.bf16.mxu1 %v2997_v21  ;;  %4743 = vst [vmem:[#allocation4_spill] sm:$0xff] %v3146_v33  ;;  %v878_v37 = vmul.f32 %v3151_v34, %v3146_v33  ;;  %v1065_v48 = vmul.f32 %v3170_v41, %v3165_v39 }
  0x1a   : > { %2909 = vmatprep.subr.bf16.mxu0 %v2996_v20 }
  0x1b   : > { %v947_v47 = vadd.f32 %v915_v38, %v878_v37 }
  0x1c   : > { %2878 = vmatmul.mubr.msk.bf16.gmra.mrb[4].mxu0 %vm400_vm1, %v2981_v5  ;;  %2964 = vmatpush3.bf16.msra.mxu1 %v2997_v21 }
  0x1d   : > { %2881 = vmatprep.mubr.msk.bf16.mxu0 %vm400_vm1, %v2982_v6  ;;  %2910 = vmatpush3.bf16.msra.mxu0 %v2996_v20  ;;  %v1097_v60 = vadd.f32 %v1065_v48, %v947_v47 }
  0x1e   : > { %2911 = vmatprep.subr.bf16.mxu0 %v2997_v21  ;;  %2957 = vmatprep.subr.bf16.mxu1 %v2998_v22 }
  0x20   : > { %2965 = vmatpush3.bf16.msra.mxu1 %v2998_v22 }
  0x21   : > { %2912 = vmatpush3.bf16.msra.mxu0 %v2997_v21  ;;  %2958 = vmatprep.subr.bf16.mxu1 %v2999_v23 }
  0x22   : > { %2913 = vmatprep.subr.bf16.mxu0 %v2998_v22 }
  0x24   : > { %2882 = vmatmul.mubr.msk.bf16.gmra.mrb[8].mxu0 %vm400_vm1, %v2983_v7  ;;  %2966 = vmatpush3.bf16.msra.mxu1 %v2999_v23 }
  0x25   : > { %2885 = vmatprep.mubr.msk.bf16.mxu0 %vm400_vm1, %v2984_v8  ;;  %2914 = vmatpush3.bf16.msra.mxu0 %v2998_v22 }
  0x26   : > { %2915 = vmatprep.subr.bf16.mxu0 %v2999_v23  ;;  %2959 = vmatprep.subr.bf16.mxu1 %v3000_v24 }
  0x28   : > { %2967 = vmatpush3.bf16.msra.mxu1 %v3000_v24 }
  0x29   : > { %2916 = vmatpush3.bf16.msra.mxu0 %v2999_v23  ;;  %2960 = vmatprep.subr.bf16.mxu1 %v3001_v25 }
  0x2a   : > { %2917 = vmatprep.subr.bf16.mxu0 %v3000_v24 }
  0x2c   : > { %2886 = vmatmul.mubr.msk.bf16.gmra.mrb[12].mxu0 %vm400_vm1, %v2985_v9  ;;  %2968 = vmatpush3.bf16.msra.mxu1 %v3001_v25 }
  0x2d   : > { %2889 = vmatprep.mubr.msk.bf16.mxu0 %vm400_vm1, %v2986_v10  ;;  %2918 = vmatpush3.bf16.msra.mxu0 %v3000_v24 }
  0x2e   : > { %2919 = vmatprep.subr.bf16.mxu0 %v3001_v25 }
  0x31   : > { %2920 = vmatpush3.bf16.msra.mxu0 %v3001_v25 }
  0x34   : > { %2890 = vmatmul.mubr.msk.bf16.gmra.mrb[16].mxu0 %vm400_vm1, %v2987_v11 }
  0x35   : > { %2893 = vmatprep.mubr.msk.bf16.mxu0 %vm400_vm1, %v2988_v12 }
  0x3c   : > { %2894 = vmatmul.mubr.msk.bf16.gmra.mrb[20].mxu0 %vm400_vm1, %v2989_v13 }
  0x3d   : > { %2897 = vmatprep.mubr.msk.bf16.mxu0 %vm400_vm1, %v2990_v14 }
  0x44   : > { %2898 = vmatmul.mubr.msk.bf16.gmra.mrb[24].mxu0 %vm400_vm1, %v2991_v15 }
  0x45   : > { %2901 = vmatprep.mubr.msk.bf16.mxu0 %vm400_vm1, %v2992_v16 }
  0x4c   : > { %2902 = vmatmul.mubr.msk.bf16.gmra.mrb[28].mxu0 %vm400_vm1, %v2993_v17 }
  0xe7   : > { %v2875_v40 = vpop.f32.mrb[0].mxu0 }
  0xe8   : > { %v496_v42 = vadd.f32 %v2875_v40, %v3158_v36  ;;  %v487_v43 = vpop.f32.mrb[1].mxu0 }
  0xe9   : > { %v488_v44 = vadd.f32 %v487_v43, %v3158_v36  ;;  %v2876_v45 = vpop.f32.mrb[2].mxu0 }
  0xea   : > { %v616_v46 = vmax.f32 %v496_v42, 0.0  ;;  %v499_v49 = vadd.f32 %v2876_v45, %v3158_v36  ;;  %v490_v50 = vpop.f32.mrb[3].mxu0  ;;  %v3243_v42 = vld [vmem:[%s4683_s3 + $0x5] ss:$0 sm:$0xff] }
  0xeb   : > { %v614_v51 = vmax.f32 %v488_v44, 0.0  ;;  %v491_v52 = vadd.f32 %v490_v50, %v3158_v36 }
  0xec   : > { %v3178_v53 = vmin.f32 %v616_v46, 6.0  ;;  %v617_v55 = vmax.f32 %v499_v49, 0.0 }
  0xed   : > { %v646_v56 = vmin.f32 %v614_v51, 6.0  ;;  %v615_v57 = vmax.f32 %v491_v52, 0.0 }
  0xee   : > { %v792_v58 = vrot.slane %v3178_v53, 7  ;;  %v919_v59 = vmul.f32 %v3156_v35, %v3178_v53  ;;  %v3198_v63 = vmul.f32 %v3183_v54, %v3178_v53  ;;  %v3206_v5 = vmin.f32 %v617_v55, 6.0 }
  0xef   : > { %v791_v0 = vrot.slane %v646_v56, 7  ;;  %v917_v1 = vmul.f32 %v3156_v35, %v646_v56  ;;  %v2879_v2 = vpop.f32.mrb[4].mxu0  ;;  %v980_v4 = vrot.slane %v646_v56, 1  ;;  %v647_v6 = vmin.f32 %v615_v57, 6.0 }
  0xf0   : > { %v3204_v3 = vsel %vm840_vm2, %v3146_v33, %v792_v58  ;;  %v503_v7 = vpop.f32.mrb[5].mxu0  ;;  %v1331_v10 = vmul.f32 %v3183_v54, %v646_v56  ;;  %v512_v11 = vadd.f32 %v2879_v2, %v3158_v36  ;;  %v808_v16 = vrot.slane %v3206_v5, 7 }
  0xf1   : > { %v882_v8 = vmul.f32 %v3151_v34, %v3204_v3  ;;  %v858_v9 = vsel %vm840_vm2, %v3146_v33, %v791_v0  ;;  %v2880_v12 = vpop.f32.mrb[6].mxu0  ;;  %v1264_v13 = vmul.f32 %v3194_v62, %v3204_v3  ;;  %v920_v19 = vmul.f32 %v3156_v35, %v3206_v5 }
  0xf2   : > { %v880_v14 = vmul.f32 %v3151_v34, %v858_v9  ;;  %v1262_v15 = vmul.f32 %v3194_v62, %v858_v9  ;;  %v506_v17 = vpop.f32.mrb[7].mxu0  ;;  %v807_v20 = vrot.slane %v647_v6, 7  ;;  %v504_v21 = vadd.f32 %v503_v7, %v3158_v36 }
  0xf3   : > { %v3220_v18 = vadd.f32 %v919_v59, %v882_v8  ;;  %v3227_v23 = vsel %vm840_vm2, %v792_v58, %v808_v16  ;;  %v1334_v25 = vmul.f32 %v3183_v54, %v3206_v5  ;;  %v996_v30 = vrot.slane %v647_v6, 1 }
  0xf4   : > { %v949_v22 = vadd.f32 %v917_v1, %v880_v14  ;;  %v1294_v26 = vadd.f32 %v1262_v15, %v1097_v60  ;;  %v883_v27 = vmul.f32 %v3151_v34, %v3227_v23  ;;  %v842_v28 = vsel %vm840_vm2, %v791_v0, %v807_v20 }
  0xf5   : > { %v881_v31 = vmul.f32 %v3151_v34, %v842_v28  ;;  %v918_v37 = vmul.f32 %v3156_v35, %v647_v6  ;;  %v1263_v38 = vmul.f32 %v3194_v62, %v842_v28  ;;  %v1332_v40 = vmul.f32 %v3183_v54, %v647_v6  ;;  %v3292_v28 = vld [vmem:[%s4683_s3 + $0x6] ss:$0 sm:$0xff] }
  0xf6   : > { %v3245_v43 = vadd.f32 %v920_v19, %v883_v27  ;;  %v1029_v44 = vsel %vm1027_vm3, %v996_v30, %v3165_v39  ;;  %v1045_v45 = vsel %vm1027_vm3, %v980_v4, %v996_v30  ;;  %v620_v46 = vmax.f32 %v512_v11, 0.0 }
  0xf7   : > { %v2883_v47 = vpop.f32.mrb[8].mxu0  ;;  %v950_v48 = vadd.f32 %v918_v37, %v881_v31  ;;  %v1067_v49 = vmul.f32 %v3170_v41, %v1045_v45  ;;  %v1068_v50 = vmul.f32 %v3170_v41, %v1029_v44  ;;  %v1295_v51 = vadd.f32 %v1263_v38, %v1097_v60 }
  0xf8   : > { %v519_v52 = vpop.f32.mrb[9].mxu0  ;;  %v1265_v55 = vmul.f32 %v3194_v62, %v3227_v23  ;;  %v1481_v56 = vmul.f32 %v3243_v42, %v1029_v44  ;;  %v3257_v57 = vmin.f32 %v620_v46, 6.0  ;;  %v618_v58 = vmax.f32 %v504_v21, 0.0 }
  0xf9   : > { %v2884_v59 = vpop.f32.mrb[10].mxu0  ;;  %v1099_v0 = vadd.f32 %v1067_v49, %v949_v22  ;;  %v1100_v1 = vadd.f32 %v1068_v50, %v950_v48  ;;  %v1364_v2 = vadd.f32 %v1332_v40, %v1295_v51  ;;  %v515_v4 = vadd.f32 %v2880_v12, %v3158_v36 }
  0xfa   : > { %v522_v6 = vpop.f32.mrb[11].mxu0  ;;  %v3260_v7 = vadd.f32 %v1331_v10, %v1294_v26  ;;  %v3263_v60 = vmul.f32 %v3243_v42, %v1045_v45  ;;  %v650_v9 = vmin.f32 %v618_v58, 6.0  ;;  %v3272_v19 = vmul.f32 %v3156_v35, %v3257_v57 }
  0xfb   : > { %v3266_v11 = vadd.f32 %v1264_v13, %v1099_v0  ;;  %v1297_v14 = vadd.f32 %v1265_v55, %v1100_v1  ;;  %v3268_v15 = vadd.f32 %v1481_v56, %v1364_v2  ;;  %v621_v16 = vmax.f32 %v515_v4, 0.0 }
  0xfc   : > { %v3276_v10 = vmul.f32 %v3183_v54, %v3257_v57  ;;  %v793_v12 = vrot.slane %v650_v9, 7  ;;  %v921_v20 = vmul.f32 %v3156_v35, %v650_v9  ;;  %v982_v22 = vrot.slane %v650_v9, 1 }
  0xfd   : > { %v3279_v21 = vadd.f32 %v1334_v25, %v1297_v14  ;;  %v3281_v13 = vmin.f32 %v621_v16, 6.0  ;;  %v507_v26 = vadd.f32 %v506_v17, %v3158_v36  ;;  %v3297_v25 = vld [vmem:[%s4683_s3 + $0x7] ss:$0 sm:$0xff]  ;;  %v528_v30 = vadd.f32 %v2883_v47, %v3158_v36 }
  0xfe   : > { %4744 = vst [vmem:[#allocation5_spill] sm:$0xff] %v3276_v10  ;;  %v3287_v27 = vsel %vm840_vm2, %v3146_v33, %v793_v12  ;;  %v520_v31 = vadd.f32 %v519_v52, %v3158_v36  ;;  %v531_v17 = vadd.f32 %v2884_v59, %v3158_v36  ;;  %v3305_v40 = vmul.f32 %v3183_v54, %v650_v9 }
  0xff   : > { %4745 = vst [vmem:[#allocation6_spill] sm:$0xff] %v3287_v27  ;;  %v2887_v37 = vpop.f32.mrb[12].mxu0  ;;  %v884_v38 = vmul.f32 %v3151_v34, %v3287_v27  ;;  %v3309_v44 = vmul.f32 %v3292_v28, %v3287_v27  ;;  %v3312_v45 = vmul.f32 %v3297_v25, %v650_v9  ;;  %v619_v48 = vmax.f32 %v507_v26, 0.0 }
 0x100   : > { %4746 = vst [vmem:[#allocation7_spill] sm:$0xff] %v3305_v40  ;;  %v535_v46 = vpop.f32.mrb[13].mxu0  ;;  %v624_v49 = vmax.f32 %v528_v30, 0.0  ;;  %v622_v50 = vmax.f32 %v520_v31, 0.0  ;;  %v3317_v52 = vmul.f32 %v3156_v35, %v3281_v13  ;;  %v625_v55 = vmax.f32 %v531_v17, 0.0 }
 0x101   : > { %v2888_v51 = vpop.f32.mrb[14].mxu0  ;;  %v523_v56 = vadd.f32 %v522_v6, %v3158_v36  ;;  %v544_v58 = vadd.f32 %v2887_v37, %v3158_v36  ;;  %v3323_v0 = vadd.f32 %v921_v20, %v884_v38  ;;  %v3327_v1 = vmul.f32 %v3183_v54, %v3281_v13 }
 0x102   : > { %v3321_v59 = vpop.f32.mrb[15].mxu0  ;;  %v651_v2 = vmin.f32 %v619_v48, 6.0  ;;  %v3329_v4 = vmin.f32 %v624_v49, 6.0  ;;  %v3331_v9 = vmin.f32 %v622_v50, 6.0  ;;  %v3333_v14 = vmin.f32 %v625_v55, 6.0 }
 0x103   : > { %4747 = vst [vmem:[#allocation8_spill] sm:$0xff] %v3327_v1  ;;  %v623_v16 = vmax.f32 %v523_v56, 0.0  ;;  %v536_v6 = vadd.f32 %v535_v46, %v3158_v36  ;;  %v628_v31 = vmax.f32 %v544_v58, 0.0  ;;  %v547_v20 = vadd.f32 %v2888_v51, %v3158_v36 }
 0x104   : > { %4748 = vst [vmem:[#allocation9_spill] sm:$0xff] %v3329_v4  ;;  %4749 = vst [vmem:[#allocation10_spill] sm:$0xff] %v3331_v9  ;;  %v809_v26 = vrot.slane %v651_v2, 7  ;;  %v998_v30 = vrot.slane %v651_v2, 1  ;;  %v922_v17 = vmul.f32 %v3156_v35, %v651_v2  ;;  %v3339_v37 = vmul.f32 %v3183_v54, %v651_v2 }
 0x105   : > { %4750 = vst [vmem:[#allocation11_spill] sm:$0xff] %v3333_v14  ;;  %v3342_v38 = vmul.f32 %v3297_v25, %v651_v2  ;;  %v796_v48 = vrot.slane %v3329_v4, 7  ;;  %v927_v51 = vmul.f32 %v3156_v35, %v3329_v4  ;;  %v3369_v2 = vmul.f32 %v3183_v54, %v3329_v4 }
 0x106   : > { %4751 = vst [vmem:[#allocation12_spill] sm:$0xff] %v3339_v37  ;;  %v3347_v49 = vsel %vm840_vm2, %v793_v12, %v809_v26  ;;  %v3352_v46 = vsel %vm1027_vm3, %v998_v30, %v3165_v39  ;;  %v3356_v50 = vsel %vm1027_vm3, %v982_v22, %v998_v30  ;;  %v795_v58 = vrot.slane %v3331_v9, 7 }
 0x107   : > { %4752 = vst [vmem:[#allocation13_spill] sm:$0xff] %v3347_v49  ;;  %v2891_v55 = vpop.f32.mrb[16].mxu0  ;;  %v885_v56 = vmul.f32 %v3151_v34, %v3347_v49  ;;  %v3364_v12 = vmul.f32 %v3170_v41, %v3356_v50  ;;  %4753 = vst [vmem:[#allocation14_spill] sm:$0xff] %v3369_v2  ;;  %v1072_v22 = vmul.f32 %v3170_v41, %v3352_v46 }
 0x108   : > { %v3371_v26 = vpop.f32.mrb[17].mxu0  ;;  %v3377_v30 = vmul.f32 %v3292_v28, %v3347_v49  ;;  %v3382_v8 = vsel %vm840_vm2, %v3146_v33, %v796_v48  ;;  %v925_v32 = vmul.f32 %v3156_v35, %v3331_v9  ;;  %v3399_v10 = vsel %vm840_vm2, %v3146_v33, %v795_v58 }
 0x109   : > { %4754 = vst [vmem:[#allocation15_spill] sm:$0xff] %v3382_v8  ;;  %v3385_v47 = vpop.f32.mrb[18].mxu0  ;;  %v954_v61 = vadd.f32 %v922_v17, %v885_v56  ;;  %v890_v24 = vmul.f32 %v3151_v34, %v3382_v8  ;;  %v3394_v1 = vmul.f32 %v3194_v62, %v3382_v8  ;;  %v3403_v17 = vmul.f32 %v3183_v54, %v3331_v9 }
 0x10a   : > { %v554_v4 = vpop.f32.mrb[19].mxu0  ;;  %v812_v56 = vrot.slane %v3333_v14, 7  ;;  %v888_v2 = vmul.f32 %v3151_v34, %v3399_v10  ;;  %v928_v8 = vmul.f32 %v3156_v35, %v3333_v14  ;;  %v3417_v49 = vmin.f32 %v623_v16, 6.0 }
 0x10b   : > { %4755 = vst [vmem:[#allocation16_spill] sm:$0xff] %v3394_v1  ;;  %4756 = vst [vmem:[#allocation17_spill] sm:$0xff] %v3403_v17  ;;  %v3406_v37 = vadd.f32 %v1072_v22, %v954_v61  ;;  %v3419_v9 = vmin.f32 %v628_v31, 6.0  ;;  %v626_v17 = vmax.f32 %v536_v6, 0.0  ;;  %v3421_v27 = vadd.f32 %v927_v51, %v890_v24 }
 0x10c   : > { %v3415_v40 = vsel %vm840_vm2, %v796_v48, %v812_v56  ;;  %4759 = vst [vmem:[#allocation20_spill] sm:$0xff] %v3417_v49  ;;  %v3427_v22 = vmul.f32 %v3183_v54, %v3333_v14  ;;  %v3429_v1 = vadd.f32 %v925_v32, %v888_v2  ;;  %v811_v16 = vrot.slane %v3417_v49, 7 }
 0x10d   : > { %4757 = vst [vmem:[#allocation18_spill] sm:$0xff] %v3406_v37  ;;  %4758 = vst [vmem:[#allocation19_spill] sm:$0xff] %v3415_v40  ;;  %v891_v61 = vmul.f32 %v3151_v34, %v3415_v40  ;;  %v629_v37 = vmax.f32 %v547_v20, 0.0  ;;  %v3433_v48 = vmul.f32 %v3194_v62, %v3415_v40  ;;  %v926_v24 = vmul.f32 %v3156_v35, %v3417_v49 }
 0x10e   : > { %4760 = vst [vmem:[#allocation21_spill] sm:$0xff] %v3419_v9  ;;  %4761 = vst [vmem:[#allocation22_spill] sm:$0xff] %v3421_v27  ;;  %v3445_v20 = vmul.f32 %v3183_v54, %v3417_v49  ;;  %v798_v32 = vrot.slane %v3419_v9, 7  ;;  %v3452_v56 = vsel %vm840_vm2, %v795_v58, %v811_v16  ;;  %v3472_v16 = vmul.f32 %v3183_v54, %v3419_v9 }
 0x10f   : > { %4762 = vst [vmem:[#allocation23_spill] sm:$0xff] %v3427_v22  ;;  %4763 = vst [vmem:[#allocation24_spill] sm:$0xff] %v3429_v1  ;;  %v3438_v6 = vpop.f32.mrb[20].mxu0  ;;  %v3440_v31 = vadd.f32 %v928_v8, %v891_v61  ;;  %v931_v22 = vmul.f32 %v3156_v35, %v3419_v9  ;;  %v3458_v8 = vmin.f32 %v629_v37, 6.0  ;;  %v889_v51 = vmul.f32 %v3151_v34, %v3452_v56 }
 0x110   : > { %4764 = vst [vmem:[#allocation25_spill] sm:$0xff] %v3433_v48  ;;  %4766 = vst [vmem:[#allocation27_spill] sm:$0xff] %v3445_v20  ;;  %v3448_v2 = vpop.f32.mrb[21].mxu0  ;;  %v3456_v48 = vmin.f32 %v626_v17, 6.0  ;;  %v3467_v40 = vsel %vm840_vm2, %v3146_v33, %v798_v32  ;;  %v539_v27 = vadd.f32 %v3321_v59, %v3158_v36 }
 0x111   : > { %4765 = vst [vmem:[#allocation26_spill] sm:$0xff] %v3440_v31  ;;  %4768 = vst [vmem:[#allocation29_spill] sm:$0xff] %v3458_v8  ;;  %v3460_v61 = vpop.f32.mrb[22].mxu0  ;;  %v894_v37 = vmul.f32 %v3151_v34, %v3467_v40  ;;  %v560_v31 = vadd.f32 %v2891_v55, %v3158_v36  ;;  %v3482_v14 = vadd.f32 %v926_v24, %v889_v51  ;;  %v814_v9 = vrot.slane %v3458_v8, 7 }
 0x112   : > { %4767 = vst [vmem:[#allocation28_spill] sm:$0xff] %v3456_v48  ;;  %4769 = vst [vmem:[#allocation30_spill] sm:$0xff] %v3467_v40  ;;  %v3474_v17 = vpop.f32.mrb[23].mxu0  ;;  %v797_v20 = vrot.slane %v3456_v48, 7  ;;  %v3486_v58 = vmul.f32 %v3194_v62, %v3467_v40  ;;  %v3501_v55 = vmul.f32 %v3183_v54, %v3456_v48 }
 0x113   : > { %4770 = vst [vmem:[#allocation31_spill] sm:$0xff] %v3472_v16  ;;  %4771 = vst [vmem:[#allocation32_spill] sm:$0xff] %v3482_v14  ;;  %v929_v16 = vmul.f32 %v3156_v35, %v3456_v48  ;;  %v3491_v1 = vadd.f32 %v931_v22, %v894_v37  ;;  %v3507_v51 = vsel %vm840_vm2, %v798_v32, %v814_v9  ;;  %v632_v40 = vmax.f32 %v560_v31, 0.0 }
 0x114   : > { %4772 = vst [vmem:[#allocation33_spill] sm:$0xff] %v3486_v58  ;;  %v3496_v49 = vsel %vm840_vm2, %v3146_v33, %v797_v20  ;;  %4775 = vst [vmem:[#allocation36_spill] sm:$0xff] %v3501_v55  ;;  %v932_v22 = vmul.f32 %v3156_v35, %v3458_v8  ;;  %v895_v59 = vmul.f32 %v3151_v34, %v3507_v51  ;;  %v627_v55 = vmax.f32 %v539_v27, 0.0 }
 0x115   : > { %4773 = vst [vmem:[#allocation34_spill] sm:$0xff] %v3491_v1  ;;  %4774 = vst [vmem:[#allocation35_spill] sm:$0xff] %v3496_v49  ;;  %v892_v24 = vmul.f32 %v3151_v34, %v3496_v49  ;;  %v3514_v58 = vmul.f32 %v3194_v62, %v3496_v49  ;;  %v3522_v9 = vmul.f32 %v3183_v54, %v3458_v8  ;;  %v3539_v8 = vmin.f32 %v632_v40, 6.0 }
 0x116   : > { %4776 = vst [vmem:[#allocation37_spill] sm:$0xff] %v3507_v51  ;;  %v552_v32 = vadd.f32 %v3371_v26, %v3158_v36  ;;  %v563_v37 = vadd.f32 %v3385_v47, %v3158_v36  ;;  %v555_v49 = vadd.f32 %v554_v4, %v3158_v36  ;;  %v3531_v48 = vadd.f32 %v932_v22, %v895_v59 }
 0x117   : > { %4777 = vst [vmem:[#allocation38_spill] sm:$0xff] %v3514_v58  ;;  %v3518_v1 = vpop.f32.mrb[24].mxu0  ;;  %4779 = vst [vmem:[#allocation40_spill] sm:$0xff] %v3522_v9  ;;  %v3535_v27 = vmul.f32 %v3194_v62, %v3507_v51  ;;  %v3537_v31 = vmin.f32 %v627_v55, 6.0  ;;  %v4785_v47 = vrot.slane %v3206_v5, 1  ;;  %v4786_v4 = vrot.slane %v3178_v53, 1 }
 0x118   : > { %4778 = vst [vmem:[#allocation39_spill] sm:$0xff] %v3518_v1  ;;  %v3529_v58 = vpop.f32.mrb[25].mxu0  ;;  %4780 = vst [vmem:[#allocation41_spill] sm:$0xff] %v3531_v48  ;;  %v630_v26 = vmax.f32 %v552_v32, 0.0  ;;  %v633_v1 = vmax.f32 %v563_v37, 0.0  ;;  %v631_v14 = vmax.f32 %v555_v49, 0.0  ;;  %v3551_v51 = vadd.f32 %v929_v16, %v892_v24 }
 0x119   : > { %4781 = vst [vmem:[#allocation42_spill] sm:$0xff] %v3535_v27  ;;  %4782 = vst [vmem:[#allocation43_spill] sm:$0xff] %v3537_v31  ;;  %v3541_v9 = vpop.f32.mrb[26].mxu0  ;;  %v1046_v59 = vsel %vm1027_vm3, %v4786_v4, %v4785_v47  ;;  %v813_v55 = vrot.slane %v3537_v31, 7  ;;  %v930_v40 = vmul.f32 %v3156_v35, %v3537_v31  ;;  %v4789_v37 = vmov %v4785_v47 }
 0x11a   : > { %4783 = vst [vmem:[#allocation44_spill] sm:$0xff] %v3539_v8  ;;  %4784 = vst [vmem:[#allocation45_spill] sm:$0xff] %v3541_v9  ;;  %v3549_v22 = vpop.f32.mrb[27].mxu0  ;;  %v3561_v49 = vsel %vm1027_vm3, %v4789_v37, %v3165_v39  ;;  %v3566_v47 = vmul.f32 %v3183_v54, %v3537_v31  ;;  %v800_v16 = vrot.slane %v3539_v8, 7  ;;  %v935_v24 = vmul.f32 %v3156_v35, %v3539_v8 }
 0x11b   : > { %4787 = vst [vmem:[#allocation46_spill] sm:$0xff] %v3549_v22  ;;  %4788 = vst [vmem:[#allocation47_spill] sm:$0xff] %v3551_v51  ;;  %v3573_v4 = vsel %vm840_vm2, %v797_v20, %v813_v55  ;;  %v3576_v48 = vmin.f32 %v630_v26, 6.0  ;;  %v3578_v37 = vmin.f32 %v633_v1, 6.0  ;;  %v3589_v51 = vmul.f32 %v3183_v54, %v3539_v8 }
 0x11c   : > { %4790 = vst [vmem:[#allocation48_spill] sm:$0xff] %v3566_v47  ;;  %4791 = vst [vmem:[#allocation49_spill] sm:$0xff] %v3573_v4  ;;  %v893_v32 = vmul.f32 %v3151_v34, %v3573_v4  ;;  %v3585_v47 = vsel %vm840_vm2, %v3146_v33, %v800_v16  ;;  %v3591_v20 = vmin.f32 %v631_v14, 6.0  ;;  %v3595_v26 = vmul.f32 %v3194_v62, %v3573_v4 }
 0x11d   : > { %4792 = vst [vmem:[#allocation50_spill] sm:$0xff] %v3576_v48  ;;  %4793 = vst [vmem:[#allocation51_spill] sm:$0xff] %v3578_v37  ;;  %v898_v1 = vmul.f32 %v3151_v34, %v3585_v47  ;;  %v799_v55 = vrot.slane %v3576_v48, 7  ;;  %v3601_v27 = vmul.f32 %v3170_v41, %v1046_v59  ;;  %v3609_v14 = vmul.f32 %v3194_v62, %v3585_v47 }
 0x11e   : > { %4794 = vst [vmem:[#allocation52_spill] sm:$0xff] %v3585_v47  ;;  %4795 = vst [vmem:[#allocation53_spill] sm:$0xff] %v3589_v51  ;;  %v3605_v22 = vadd.f32 %v930_v40, %v893_v32  ;;  %v933_v51 = vmul.f32 %v3156_v35, %v3576_v48  ;;  %v816_v8 = vrot.slane %v3578_v37, 7  ;;  %v3626_v32 = vmul.f32 %v3183_v54, %v3576_v48 }
 0x11f   : > { %4796 = vst [vmem:[#allocation54_spill] sm:$0xff] %v3595_v26  ;;  %v3603_v31 = vpop.f32.mrb[28].mxu0  ;;  %4797 = vst [vmem:[#allocation55_spill] sm:$0xff] %v3609_v14  ;;  %v3616_v4 = vadd.f32 %v935_v24, %v898_v1  ;;  %v3621_v9 = vsel %vm840_vm2, %v3146_v33, %v799_v55  ;;  %v936_v1 = vmul.f32 %v3156_v35, %v3578_v37 }
 0x120   : > { %v3614_v26 = vpop.f32.mrb[29].mxu0  ;;  %4800 = vst [vmem:[#allocation58_spill] sm:$0xff] %v3621_v9  ;;  %4801 = vst [vmem:[#allocation59_spill] sm:$0xff] %v3626_v32  ;;  %v896_v47 = vmul.f32 %v3151_v34, %v3621_v9  ;;  %v3634_v24 = vsel %vm840_vm2, %v800_v16, %v816_v8  ;;  %v3643_v40 = vmul.f32 %v3194_v62, %v3621_v9  ;;  %v815_v8 = vrot.slane %v3591_v20, 7 }
 0x121   : > { %4798 = vst [vmem:[#allocation56_spill] sm:$0xff] %v3614_v26  ;;  %4799 = vst [vmem:[#allocation57_spill] sm:$0xff] %v3616_v4  ;;  %v3628_v14 = vpop.f32.mrb[30].mxu0  ;;  %v899_v32 = vmul.f32 %v3151_v34, %v3634_v24  ;;  %v3649_v48 = vmul.f32 %v3183_v54, %v3578_v37  ;;  %v3656_v4 = vmul.f32 %v3194_v62, %v3634_v24 }
 0x122   : > { %4802 = vst [vmem:[#allocation60_spill] sm:$0xff] %v3628_v14  ;;  %4803 = vst [vmem:[#allocation61_spill] sm:$0xff] %v3634_v24  ;;  %v3639_v26 = vpop.f32.mrb[31].mxu0  ;;  %v3652_v16 = vadd.f32 %v933_v51, %v896_v47  ;;  %v3665_v14 = vsel %vm840_vm2, %v799_v55, %v815_v8  ;;  %v1482_v51 = vmul.f32 %v3243_v42, %v1046_v59  ;;  %v3673_v47 = vld [vmem:[%s4683_s3 + $0x8] ss:$0 sm:$0xff] }
 0x123   : > { %4804 = vst [vmem:[#allocation62_spill] sm:$0xff] %v3639_v26  ;;  %4805 = vst [vmem:[#allocation63_spill] sm:$0xff] %v3643_v40  ;;  %v934_v26 = vmul.f32 %v3156_v35, %v3591_v20  ;;  %v3661_v9 = vadd.f32 %v936_v1, %v899_v32  ;;  %v3679_v32 = vmul.f32 %v3183_v54, %v3591_v20 }
 0x124   : > { %4806 = vst [vmem:[#allocation64_spill] sm:$0xff] %v3649_v48  ;;  %4807 = vst [vmem:[#allocation65_spill] sm:$0xff] %v3656_v4  ;;  %v1365_v48 = vadd.f32 %v3198_v63, %v3266_v11  ;;  %v897_v4 = vmul.f32 %v3151_v34, %v3665_v14  ;;  %v1483_v55 = vmul.f32 %v3243_v42, %v3561_v49 }
 0x125   : > { %4808 = vst [vmem:[#allocation66_spill] sm:$0xff] %v3661_v9  ;;  %4809 = vst [vmem:[#allocation67_spill] sm:$0xff] %v3679_v32  ;;  %v1512_v63 = vadd.f32 %v3263_v60, %v3260_v7  ;;  %v1678_v1 = vmul.f32 %v3292_v28, %v3204_v3  ;;  %v1679_v8 = vmul.f32 %v3292_v28, %v3227_v23 }
 0x126   : > { %v1514_v11 = vadd.f32 %v1482_v51, %v1365_v48  ;;  %v1747_v40 = vmul.f32 %v3297_v25, %v3178_v53  ;;  %v3691_v24 = vadd.f32 %v934_v26, %v897_v4  ;;  %v1515_v32 = vadd.f32 %v1483_v55, %v3279_v21 }
 0x127   : > { %v1748_v9 = vmul.f32 %v3297_v25, %v3206_v5  ;;  %v1896_v37 = vmul.f32 %v3673_v47, %v1046_v59  ;;  %v1710_v7 = vadd.f32 %v1678_v1, %v1512_v63  ;;  %v1711_v60 = vadd.f32 %v1679_v8, %v3268_v15 }
 0x128   : > { %v1712_v3 = vadd.f32 %v3309_v44, %v1514_v11  ;;  %v1897_v23 = vmul.f32 %v3673_v47, %v3561_v49  ;;  %v1713_v48 = vadd.f32 %v3377_v30, %v1515_v32  ;;  %v1898_v53 = vmul.f32 %v3673_v47, %v3356_v50  ;;  %v3714_v30 = vld [vmem:[%s4684_s4] ss:$0 sm:$0xff] }
 0x129   : > { %v1899_v21 = vmul.f32 %v3673_v47, %v3352_v46  ;;  %v576_v5 = vadd.f32 %v3438_v6, %v3158_v36  ;;  %v1779_v59 = vadd.f32 %v1747_v40, %v1710_v7  ;;  %v1780_v4 = vadd.f32 %v1748_v9, %v1711_v60 }
 0x12a   : > { %v1781_v15 = vadd.f32 %v3312_v45, %v1712_v3  ;;  %v568_v44 = vadd.f32 %v3448_v2, %v3158_v36  ;;  %v1782_v26 = vadd.f32 %v3342_v38, %v1713_v48  ;;  %v579_v32 = vadd.f32 %v3460_v61, %v3158_v36 }
 0x12b   : > { %v636_v51 = vmax.f32 %v576_v5, 0.0  ;;  %v571_v6 = vadd.f32 %v3474_v17, %v3158_v36  ;;  %v1928_v9 = vadd.f32 %v1896_v37, %v1779_v59  ;;  %v1929_v40 = vadd.f32 %v1897_v23, %v1780_v4 }
 0x12c   : > { %v1930_v45 = vadd.f32 %v1898_v53, %v1781_v15  ;;  %v634_v55 = vmax.f32 %v568_v44, 0.0  ;;  %v3723_v2 = vmul.f32 %v3194_v62, %v3665_v14  ;;  %v3727_v63 = vmul.f32 %v3170_v41, %v3561_v49 }
 0x12d   : > { %v1931_v38 = vadd.f32 %v1899_v21, %v1782_v26  ;;  %v3729_v11 = vmin.f32 %v636_v51, 6.0  ;;  %v1967_v61 = vadd.f32 %v3714_v30, %v1928_v9  ;;  %v1968_v1 = vadd.f32 %v3714_v30, %v1929_v40 }
 0x12e   : > { %v1969_v17 = vadd.f32 %v3714_v30, %v1930_v45  ;;  %v3734_v37 = vmin.f32 %v634_v55, 6.0  ;;  %v637_v60 = vmax.f32 %v579_v32, 0.0  ;;  %v635_v3 = vmax.f32 %v571_v6, 0.0 }
 0x12f   : > { %4810 = vst [vmem:[#allocation68_spill] sm:$0xff] %v3729_v11  ;;  %v1970_v8 = vadd.f32 %v3714_v30, %v1931_v38  ;;  %v802_v7 = vrot.slane %v3729_v11, 7  ;;  %v1999_v23 = vmax.f32 %v1967_v61, 0.0  ;;  %v2000_v49 = vmax.f32 %v1968_v1, 0.0 }
 0x130   : > { %v2001_v48 = vmax.f32 %v1969_v17, 0.0  ;;  %v939_v53 = vmul.f32 %v3156_v35, %v3729_v11  ;;  %v801_v4 = vrot.slane %v3734_v37, 7  ;;  %v3751_v51 = vmul.f32 %v3183_v54, %v3729_v11 }
 0x131   : > { %v2002_v21 = vmax.f32 %v1970_v8, 0.0  ;;  %v3743_v5 = vsel %vm840_vm2, %v3146_v33, %v802_v7  ;;  %v2031_v15 = vmin.f32 %v1999_v23, 6.0  ;;  %v2032_v44 = vmin.f32 %v2000_v49, 6.0 }
 0x132   : > { %4811 = vst [vmem:[#allocation69_spill] sm:$0xff] %v3743_v5  ;;  %v902_v26 = vmul.f32 %v3151_v34, %v3743_v5  ;;  %4812 = vst [vmem:[#allocation70_spill] sm:$0xff] %v3751_v51  ;;  %v2033_v32 = vmin.f32 %v2001_v48, 6.0  ;;  %v3756_v9 = vsel %vm840_vm2, %v3146_v33, %v801_v4  ;;  %v937_v40 = vmul.f32 %v3156_v35, %v3734_v37 }
 0x133   : > { %v2034_v6 = vmin.f32 %v2002_v21, 6.0  ;;  %v2063_v45 = vpack.c.bf16 %v2032_v44, %v2031_v15  ;;  %v3762_v55 = vmul.f32 %v3194_v62, %v3743_v5  ;;  %v900_v38 = vmul.f32 %v3151_v34, %v3756_v9 }
 0x134   : > { %v3767_v17 = vadd.f32 %v939_v53, %v902_v26  ;;  %v3769_v8 = vmin.f32 %v637_v60, 6.0  ;;  %v3771_v23 = vmin.f32 %v635_v3, 6.0  ;;  %v3775_v49 = vmul.f32 %v3194_v62, %v3756_v9 }
 0x135   : > { %4813 = vst [vmem:[#allocation71_spill] sm:$0xff] %v3762_v55  ;;  %v2064_v1 = vpack.c.bf16 %v2034_v6, %v2033_v32  ;;  %2921 = vmatprep.mubr.bf16.mxu0 %v2063_v45  ;;  %v3779_v48 = vmul.f32 %v3183_v54, %v3734_v37  ;;  %v4818_v21 = vrot.slane %v3281_v13, 7  ;;  %v4819_v15 = vrot.slane %v3257_v57, 7 }
 0x136   : > { %4814 = vst [vmem:[#allocation72_spill] sm:$0xff] %v3767_v17  ;;  %4815 = vst [vmem:[#allocation73_spill] sm:$0xff] %v3769_v8  ;;  %v3792_v44 = vadd.f32 %v937_v40, %v900_v38  ;;  %v818_v26 = vrot.slane %v3769_v8, 7  ;;  %v940_v32 = vmul.f32 %v3156_v35, %v3769_v8  ;;  %v983_v6 = vrot.slane %v3257_v57, 1 }
 0x137   : > { %4816 = vst [vmem:[#allocation74_spill] sm:$0xff] %v3775_v49  ;;  %4817 = vst [vmem:[#allocation75_spill] sm:$0xff] %v3779_v48  ;;  %v845_v53 = vsel %vm840_vm2, %v4819_v15, %v4818_v21  ;;  %v4820_v60 = vmov %v4819_v15  ;;  %2922 = vmatmul.mubr.bf16.vlgmr.msra.gmra.mrb[32].mxu0 %v2064_v1  ;;  %v3801_v21 = vmul.f32 %v3183_v54, %v3769_v8  ;;  %v817_v15 = vrot.slane %v3771_v23, 7  ;;  %v4829_v8 = vld [vmem:[#allocation5_spill] sm:$0xff] }
 0x138   : > { %v861_v3 = vsel %vm840_vm2, %v3146_v33, %v4820_v60  ;;  %v938_v1 = vmul.f32 %v3156_v35, %v3771_v23  ;;  %v3808_v40 = vsel %vm840_vm2, %v802_v7, %v818_v26  ;;  %v887_v60 = vmul.f32 %v3151_v34, %v845_v53 }
 0x139   : > { %4821 = vst [vmem:[#allocation76_spill] sm:$0xff] %v3801_v21  ;;  %v886_v38 = vmul.f32 %v3151_v34, %v861_v3  ;;  %v999_v59 = vrot.slane %v3281_v13, 1  ;;  %v903_v45 = vmul.f32 %v3151_v34, %v3808_v40  ;;  %v3817_v61 = vsel %vm840_vm2, %v801_v4, %v817_v15 }
 0x13a   : > { %v1101_v51 = vadd.f32 %v3601_v27, %v3220_v18  ;;  %v901_v7 = vmul.f32 %v3151_v34, %v3817_v61  ;;  %v3826_v26 = vmul.f32 %v3183_v54, %v3771_v23  ;;  %v956_v5 = vadd.f32 %v3317_v52, %v887_v60 }
 0x13b   : > { %v955_v55 = vadd.f32 %v3272_v19, %v886_v38  ;;  %v3830_v48 = vadd.f32 %v940_v32, %v903_v45  ;;  %v1032_v4 = vsel %vm1027_vm3, %v999_v59, %v3165_v39  ;;  %v1048_v18 = vsel %vm1027_vm3, %v983_v6, %v999_v59  ;;  %v4824_v32 = vld [vmem:[#allocation6_spill] sm:$0xff]  ;;  %v4825_v38 = vld [vmem:[#allocation13_spill] sm:$0xff] }
 0x13c   : > { %4822 = vst [vmem:[#allocation77_spill] sm:$0xff] %v3826_v26  ;;  %v1102_v27 = vadd.f32 %v3727_v63, %v3245_v43  ;;  %v3839_v15 = vadd.f32 %v938_v1, %v901_v7  ;;  %v1073_v21 = vmul.f32 %v3170_v41, %v1048_v18  ;;  %v1074_v19 = vmul.f32 %v3170_v41, %v1032_v4 }
 0x13d   : > { %4823 = vst [vmem:[#allocation78_spill] sm:$0xff] %v3830_v48  ;;  %v1103_v52 = vadd.f32 %v3364_v12, %v3323_v0  ;;  %v1266_v45 = vmul.f32 %v3194_v62, %v4824_v32  ;;  %v1267_v60 = vmul.f32 %v3194_v62, %v4825_v38  ;;  %v1268_v59 = vmul.f32 %v3194_v62, %v861_v3  ;;  %v4826_v48 = vld [vmem:[#allocation18_spill] sm:$0xff] }
 0x13e   : > { %v1269_v6 = vmul.f32 %v3194_v62, %v845_v53  ;;  %v1105_v43 = vadd.f32 %v1073_v21, %v955_v55  ;;  %v1106_v63 = vadd.f32 %v1074_v19, %v956_v5  ;;  %v1270_v1 = vmul.f32 %v3194_v62, %v3399_v10  ;;  %v4827_v55 = vld [vmem:[#allocation7_spill] sm:$0xff]  ;;  %v4828_v19 = vld [vmem:[#allocation12_spill] sm:$0xff] }
 0x13f   : > { %v1271_v7 = vmul.f32 %v3194_v62, %v3452_v56  ;;  %v1298_v26 = vadd.f32 %v1266_v45, %v1101_v51  ;;  %v1299_v0 = vadd.f32 %v1267_v60, %v1102_v27  ;;  %v1300_v12 = vadd.f32 %v1268_v59, %v1103_v52  ;;  %v4830_v27 = vld [vmem:[#allocation8_spill] sm:$0xff] }
 0x140   : > { %v1301_v32 = vadd.f32 %v1269_v6, %v4826_v48  ;;  %v3856_v17 = vadd.f32 %v1270_v1, %v1105_v43  ;;  %v1484_v49 = vmul.f32 %v3243_v42, %v3356_v50  ;;  %v1485_v5 = vmul.f32 %v3243_v42, %v3352_v46 }
 0x141   : > { %v3858_v38 = vadd.f32 %v1271_v7, %v1106_v63  ;;  %v1367_v21 = vadd.f32 %v4827_v55, %v1298_v26  ;;  %v1368_v11 = vadd.f32 %v4828_v19, %v1299_v0  ;;  %v1369_v51 = vadd.f32 %v4829_v8, %v1300_v12  ;;  %v4831_v12 = vld [vmem:[#allocation20_spill] sm:$0xff] }
 0x142   : > { %v1370_v52 = vadd.f32 %v4830_v27, %v1301_v32  ;;  %v3870_v48 = vmul.f32 %v3194_v62, %v3808_v40  ;;  %v3874_v45 = vmul.f32 %v3194_v62, %v3817_v61  ;;  %v1486_v50 = vmul.f32 %v3243_v42, %v1048_v18 }
 0x143   : > { %v1487_v46 = vmul.f32 %v3243_v42, %v1032_v4  ;;  %v1516_v60 = vadd.f32 %v1484_v49, %v1367_v21  ;;  %v1517_v26 = vadd.f32 %v1485_v5, %v1368_v11  ;;  %v1682_v59 = vmul.f32 %v3292_v28, %v861_v3  ;;  %v4834_v3 = vld [vmem:[#allocation10_spill] sm:$0xff] }
 0x144   : > { %v1683_v8 = vmul.f32 %v3292_v28, %v845_v53  ;;  %v1518_v6 = vadd.f32 %v1486_v50, %v1369_v51  ;;  %v1751_v63 = vmul.f32 %v3297_v25, %v3257_v57  ;;  %v1752_v1 = vmul.f32 %v3297_v25, %v3281_v13  ;;  %v4836_v50 = vld [vmem:[#allocation24_spill] sm:$0xff] }
 0x145   : > { %v1519_v43 = vadd.f32 %v1487_v46, %v1370_v52  ;;  %v1714_v7 = vadd.f32 %v1682_v59, %v1516_v60  ;;  %v4832_v32 = vrot.slane %v4831_v12, 1  ;;  %v4835_v53 = vrot.slane %v4834_v3, 1  ;;  %v4837_v60 = vld [vmem:[#allocation32_spill] sm:$0xff] }
 0x146   : > { %v1715_v0 = vadd.f32 %v1683_v8, %v1517_v26  ;;  %v1900_v57 = vmul.f32 %v3673_v47, %v1048_v18  ;;  %v1901_v55 = vmul.f32 %v3673_v47, %v1032_v4  ;;  %v1684_v27 = vmul.f32 %v3292_v28, %v3399_v10 }
 0x147   : > { %v1033_v11 = vsel %vm1027_vm3, %v4832_v32, %v3165_v39  ;;  %v4833_v49 = vmov %v4832_v32  ;;  %v1783_v19 = vadd.f32 %v1751_v63, %v1714_v7  ;;  %v1685_v52 = vmul.f32 %v3292_v28, %v3452_v56  ;;  %v4838_v7 = vld [vmem:[#allocation39_spill] sm:$0xff] }
 0x148   : > { %v1049_v5 = vsel %vm1027_vm3, %v4835_v53, %v4833_v49  ;;  %v1076_v21 = vmul.f32 %v3170_v41, %v1033_v11  ;;  %v1784_v51 = vadd.f32 %v1752_v1, %v1715_v0  ;;  %v1753_v4 = vmul.f32 %v3297_v25, %v4834_v3 }
 0x149   : > { %v1075_v13 = vmul.f32 %v3170_v41, %v1049_v5  ;;  %v1754_v18 = vmul.f32 %v3297_v25, %v4831_v12  ;;  %v1932_v59 = vadd.f32 %v1900_v57, %v1783_v19  ;;  %v1716_v63 = vadd.f32 %v1684_v27, %v1518_v6  ;;  %v4839_v6 = vld [vmem:[#allocation45_spill] sm:$0xff] }
 0x14a   : > { %v3907_v26 = vadd.f32 %v1076_v21, %v4837_v60  ;;  %v1933_v8 = vadd.f32 %v1901_v55, %v1784_v51  ;;  %v1717_v1 = vadd.f32 %v1685_v52, %v1519_v43  ;;  %v1902_v10 = vmul.f32 %v3673_v47, %v1049_v5 }
 0x14b   : > { %v3904_v46 = vadd.f32 %v1075_v13, %v4836_v50  ;;  %v1903_v56 = vmul.f32 %v3673_v47, %v1033_v11  ;;  %v592_v0 = vadd.f32 %v4838_v7, %v3158_v36  ;;  %v584_v32 = vadd.f32 %v3529_v58, %v3158_v36  ;;  %v4840_v13 = vld [vmem:[#allocation46_spill] sm:$0xff] }
 0x14c   : > { %v1971_v49 = vadd.f32 %v3714_v30, %v1932_v59  ;;  %v1972_v3 = vadd.f32 %v3714_v30, %v1933_v8  ;;  %v1785_v53 = vadd.f32 %v1753_v4, %v1716_v63  ;;  %v1786_v12 = vadd.f32 %v1754_v18, %v1717_v1 }
 0x14d   : > { %v640_v57 = vmax.f32 %v592_v0, 0.0  ;;  %v638_v55 = vmax.f32 %v584_v32, 0.0  ;;  %v595_v43 = vadd.f32 %v4839_v6, %v3158_v36  ;;  %v587_v21 = vadd.f32 %v4840_v13, %v3158_v36 }
 0x14e   : > { %v2003_v19 = vmax.f32 %v1971_v49, 0.0  ;;  %v2004_v51 = vmax.f32 %v1972_v3, 0.0  ;;  %v1934_v27 = vadd.f32 %v1902_v10, %v1785_v53  ;;  %v1935_v52 = vadd.f32 %v1903_v56, %v1786_v12 }
 0x14f   : > { %v1488_v58 = vmul.f32 %v3243_v42, %v1049_v5  ;;  %v3927_v50 = vmul.f32 %v3243_v42, %v1033_v11  ;;  %v3929_v60 = vmin.f32 %v640_v57, 6.0  ;;  %v3931_v4 = vmin.f32 %v638_v55, 6.0 }
 0x150   : > { %v2035_v18 = vmin.f32 %v2003_v19, 6.0  ;;  %v2036_v59 = vmin.f32 %v2004_v51, 6.0  ;;  %v1973_v8 = vadd.f32 %v3714_v30, %v1934_v27  ;;  %v1974_v63 = vadd.f32 %v3714_v30, %v1935_v52 }
 0x151   : > { %4841 = vst [vmem:[#allocation6_spill] sm:$0xff] %v3929_v60  ;;  %v804_v1 = vrot.slane %v3929_v60, 7  ;;  %v943_v10 = vmul.f32 %v3156_v35, %v3929_v60  ;;  %v641_v56 = vmax.f32 %v595_v43, 0.0  ;;  %v639_v5 = vmax.f32 %v587_v21, 0.0 }
 0x152   : > { %v2065_v7 = vpack.c.bf16 %v2036_v59, %v2035_v18  ;;  %v2005_v11 = vmax.f32 %v1973_v8, 0.0  ;;  %v2006_v0 = vmax.f32 %v1974_v63, 0.0  ;;  %v803_v32 = vrot.slane %v3931_v4, 7  ;;  %v4847_v59 = vld [vmem:[#allocation11_spill] sm:$0xff] }
 0x153   : > { %v3942_v49 = vsel %vm840_vm2, %v3146_v33, %v804_v1  ;;  %v3947_v53 = vmul.f32 %v3183_v54, %v3929_v60  ;;  %v941_v12 = vmul.f32 %v3156_v35, %v3931_v4  ;;  %v3961_v21 = vmul.f32 %v3183_v54, %v3931_v4  ;;  %v4874_v60 = vld [vmem:[#allocation47_spill] sm:$0xff] }
 0x154   : > { %4842 = vst [vmem:[#allocation13_spill] sm:$0xff] %v3942_v49  ;;  %2925 = vmatprep.mubr.bf16.mxu1 %v2065_v7  ;;  %v2037_v57 = vmin.f32 %v2005_v11, 6.0  ;;  %v2038_v55 = vmin.f32 %v2006_v0, 6.0  ;;  %v906_v6 = vmul.f32 %v3151_v34, %v3942_v49  ;;  %v3957_v13 = vsel %vm840_vm2, %v3146_v33, %v803_v32 }
 0x155   : > { %4843 = vst [vmem:[#allocation18_spill] sm:$0xff] %v3947_v53  ;;  %4844 = vst [vmem:[#allocation7_spill] sm:$0xff] %v3961_v21  ;;  %v3963_v19 = vmin.f32 %v641_v56, 6.0  ;;  %v3965_v51 = vmin.f32 %v639_v5, 6.0  ;;  %v3969_v52 = vmul.f32 %v3194_v62, %v3942_v49  ;;  %v904_v18 = vmul.f32 %v3151_v34, %v3957_v13 }
 0x156   : > { %v2066_v27 = vpack.c.bf16 %v2038_v55, %v2037_v57  ;;  %v4848_v8 = vrot.slane %v4847_v59, 1  ;;  %v3978_v7 = vadd.f32 %v943_v10, %v906_v6  ;;  %v3982_v56 = vmul.f32 %v3194_v62, %v3957_v13 }
 0x157   : > { %4845 = vst [vmem:[#allocation12_spill] sm:$0xff] %v3963_v19  ;;  %4846 = vst [vmem:[#allocation5_spill] sm:$0xff] %v3969_v52  ;;  %v820_v5 = vrot.slane %v3963_v19, 7  ;;  %v944_v11 = vmul.f32 %v3156_v35, %v3963_v19  ;;  %v3987_v0 = vadd.f32 %v941_v12, %v904_v18  ;;  %v3992_v55 = vmul.f32 %v3183_v54, %v3963_v19  ;;  %v4858_v52 = vld [vmem:[#allocation17_spill] sm:$0xff] }
 0x158   : > { %v1034_v63 = vsel %vm1027_vm3, %v4848_v8, %v3165_v39  ;;  %4849 = vst [vmem:[#allocation8_spill] sm:$0xff] %v3978_v7  ;;  %4850 = vst [vmem:[#allocation20_spill] sm:$0xff] %v3982_v56  ;;  %2926 = vmatmul.mubr.bf16.vlgmr.msra.gmra.mrb[0].mxu1 %v2066_v27  ;;  %v819_v10 = vrot.slane %v3965_v51, 7  ;;  %v942_v8 = vmul.f32 %v3156_v35, %v3965_v51  ;;  %v4853_v3 = vrot.slane %v4847_v59, 1  ;;  %v4854_v27 = vld [vmem:[#allocation9_spill] sm:$0xff] }
 0x159   : > { %4851 = vst [vmem:[#allocation10_spill] sm:$0xff] %v3992_v55  ;;  %v3997_v6 = vsel %vm840_vm2, %v804_v1, %v820_v5  ;;  %v4855_v12 = vrot.slane %v4854_v27, 1  ;;  %v1078_v57 = vmul.f32 %v3170_v41, %v1034_v63  ;;  %v4020_v53 = vmul.f32 %v3183_v54, %v3965_v51 }
 0x15a   : > { %4852 = vst [vmem:[#allocation24_spill] sm:$0xff] %v3997_v6  ;;  %v907_v43 = vmul.f32 %v3151_v34, %v3997_v6  ;;  %v4012_v55 = vsel %vm840_vm2, %v803_v32, %v819_v10  ;;  %v1371_v49 = vadd.f32 %v4858_v52, %v3856_v17  ;;  %v4031_v32 = vmul.f32 %v3194_v62, %v3997_v6  ;;  %v4864_v17 = vld [vmem:[#allocation15_spill] sm:$0xff] }
 0x15b   : > { %v1050_v18 = vsel %vm1027_vm3, %v4855_v12, %v4853_v3  ;;  %v905_v5 = vmul.f32 %v3151_v34, %v4012_v55  ;;  %4856 = vst [vmem:[#allocation32_spill] sm:$0xff] %v4020_v53  ;;  %v4857_v3 = vld [vmem:[#allocation26_spill] sm:$0xff]  ;;  %v4862_v34 = vld [vmem:[#allocation27_spill] sm:$0xff] }
 0x15c   : > { %v1077_v35 = vmul.f32 %v3170_v41, %v1050_v18  ;;  %v4023_v12 = vadd.f32 %v1078_v57, %v4857_v3  ;;  %v4027_v21 = vadd.f32 %v944_v11, %v907_v43  ;;  %4860 = vst [vmem:[#allocation45_spill] sm:$0xff] %v4031_v32  ;;  %v4861_v41 = vld [vmem:[#allocation22_spill] sm:$0xff]  ;;  %v1372_v1 = vadd.f32 %v4862_v34, %v3858_v38 }
 0x15d   : > { %v4038_v54 = vadd.f32 %v942_v8, %v905_v5  ;;  %v4042_v57 = vmul.f32 %v3194_v62, %v4012_v55  ;;  %v1520_v3 = vadd.f32 %v1488_v58, %v1371_v49  ;;  %v1686_v43 = vmul.f32 %v3292_v28, %v4864_v17  ;;  %v4866_v58 = vld [vmem:[#allocation43_spill] sm:$0xff] }
 0x15e   : > { %4859 = vst [vmem:[#allocation39_spill] sm:$0xff] %v4027_v21  ;;  %v4034_v10 = vadd.f32 %v1077_v35, %v4861_v41  ;;  %v1490_v52 = vmul.f32 %v3243_v42, %v1050_v18  ;;  %v1491_v11 = vmul.f32 %v3243_v42, %v1034_v63  ;;  %v1521_v35 = vadd.f32 %v3927_v50, %v1372_v1  ;;  %v4865_v41 = vld [vmem:[#allocation19_spill] sm:$0xff]  ;;  %v4869_v50 = vld [vmem:[#allocation28_spill] sm:$0xff] }
 0x15f   : > { %4863 = vst [vmem:[#allocation46_spill] sm:$0xff] %v4042_v57  ;;  %v1687_v32 = vmul.f32 %v3292_v28, %v4865_v41  ;;  %v1718_v38 = vadd.f32 %v1686_v43, %v1520_v3  ;;  %v1755_v8 = vmul.f32 %v3297_v25, %v4854_v27  ;;  %v1756_v62 = vmul.f32 %v3297_v25, %v4847_v59  ;;  %v4069_v27 = vld [vmem:[%s4683_s3 + $0x2] ss:$0 sm:$0xff]  ;;  %v4871_v43 = vld [vmem:[#allocation16_spill] sm:$0xff]  ;;  %v4873_v57 = vld [vmem:[#allocation14_spill] sm:$0xff] }
 0x160   : > { %v4867_v49 = vrot.slane %v4866_v58, 1  ;;  %v4870_v1 = vrot.slane %v4869_v50, 1  ;;  %v1304_v41 = vadd.f32 %v4871_v43, %v3904_v46  ;;  %v4875_v46 = vld [vmem:[#allocation23_spill] sm:$0xff] }
 0x161   : > { %v1719_v34 = vadd.f32 %v1687_v32, %v1521_v35  ;;  %v1787_v6 = vadd.f32 %v1755_v8, %v1718_v38  ;;  %v1904_v32 = vmul.f32 %v3673_v47, %v1050_v18 }
 0x162   : > { %v1035_v5 = vsel %vm1027_vm3, %v4867_v49, %v3165_v39  ;;  %v4868_v17 = vmov %v4867_v49  ;;  %v4872_v49 = vld [vmem:[#allocation25_spill] sm:$0xff]  ;;  %v1373_v21 = vadd.f32 %v4873_v57, %v1304_v41 }
 0x163   : > { %v1051_v3 = vsel %vm1027_vm3, %v4870_v1, %v4868_v17  ;;  %v1080_v59 = vmul.f32 %v4069_v27, %v1035_v5  ;;  %v1305_v53 = vadd.f32 %v4872_v49, %v3907_v26  ;;  %v1788_v7 = vadd.f32 %v1756_v62, %v1719_v34  ;;  %v4876_v26 = vld [vmem:[#allocation35_spill] sm:$0xff] }
 0x164   : > { %v1079_v35 = vmul.f32 %v4069_v27, %v1051_v3  ;;  %v1905_v17 = vmul.f32 %v3673_v47, %v1034_v63  ;;  %v1936_v56 = vadd.f32 %v1904_v32, %v1787_v6  ;;  %v4088_v18 = vmul.f32 %v3243_v42, %v1051_v3  ;;  %v4877_v63 = vld [vmem:[#allocation49_spill] sm:$0xff] }
 0x165   : > { %v4080_v1 = vadd.f32 %v1080_v59, %v3605_v22  ;;  %v1374_v38 = vadd.f32 %v4875_v46, %v1305_v53  ;;  %v1522_v43 = vadd.f32 %v1490_v52, %v1373_v21  ;;  %v1688_v62 = vmul.f32 %v3292_v28, %v4876_v26 }
 0x166   : > { %v4084_v19 = vadd.f32 %v1079_v35, %v4874_v60  ;;  %v1937_v8 = vadd.f32 %v1905_v17, %v1788_v7  ;;  %v1689_v22 = vmul.f32 %v3292_v28, %v4877_v63  ;;  %v1975_v34 = vadd.f32 %v3714_v30, %v1936_v56  ;;  %v4878_v28 = vld [vmem:[#allocation56_spill] sm:$0xff] }
 0x167   : > { %v1523_v57 = vadd.f32 %v1491_v11, %v1374_v38  ;;  %v1757_v60 = vmul.f32 %v3297_v25, %v4869_v50  ;;  %v1758_v53 = vmul.f32 %v3297_v25, %v4866_v58  ;;  %v1720_v59 = vadd.f32 %v1688_v62, %v1522_v43  ;;  %v4879_v11 = vld [vmem:[#allocation60_spill] sm:$0xff]  ;;  %v4880_v58 = vld [vmem:[#allocation62_spill] sm:$0xff] }
 0x168   : > { %v1976_v6 = vadd.f32 %v3714_v30, %v1937_v8  ;;  %v1906_v21 = vmul.f32 %v3673_v47, %v1051_v3  ;;  %v608_v7 = vadd.f32 %v3603_v31, %v3158_v36  ;;  %v2007_v52 = vmax.f32 %v1975_v34, 0.0 }
 0x169   : > { %v1721_v41 = vadd.f32 %v1689_v22, %v1523_v57  ;;  %v600_v56 = vadd.f32 %v4878_v28, %v3158_v36  ;;  %v611_v32 = vadd.f32 %v4879_v11, %v3158_v36  ;;  %v1789_v35 = vadd.f32 %v1757_v60, %v1720_v59 }
 0x16a   : > { %v2008_v50 = vmax.f32 %v1976_v6, 0.0  ;;  %v644_v49 = vmax.f32 %v608_v7, 0.0  ;;  %v603_v17 = vadd.f32 %v4880_v58, %v3158_v36  ;;  %v1907_v3 = vmul.f32 %v3673_v47, %v1035_v5  ;;  %v4884_v7 = vld [vmem:[#allocation29_spill] sm:$0xff] }
 0x16b   : > { %v1790_v46 = vadd.f32 %v1758_v53, %v1721_v41  ;;  %v642_v38 = vmax.f32 %v600_v56, 0.0  ;;  %v645_v8 = vmax.f32 %v611_v32, 0.0  ;;  %v2039_v31 = vmin.f32 %v2007_v52, 6.0 }
 0x16c   : > { %v2040_v43 = vmin.f32 %v2008_v50, 6.0  ;;  %v1938_v26 = vadd.f32 %v1906_v21, %v1789_v35  ;;  %v4110_v62 = vmin.f32 %v644_v49, 6.0  ;;  %v4113_v63 = vmul.f32 %v3243_v42, %v1035_v5  ;;  %v3003_v21 = vld [vmem:[%s4683_s3 + $0x4] ss:$0 sm:$0xff]  ;;  %v3004_v49 = vld [vmem:[%s4683_s3 + $0x1] ss:$0 sm:$0xff] }
 0x16d   : > { %v1939_v22 = vadd.f32 %v1907_v3, %v1790_v46  ;;  %v4115_v34 = vmin.f32 %v642_v38, 6.0  ;;  %v643_v57 = vmax.f32 %v603_v17, 0.0  ;;  %v4119_v6 = vmin.f32 %v645_v8, 6.0  ;;  %v4157_v46 = vld [vmem:[%s4683_s3 + $0x3] ss:$0 sm:$0xff]  ;;  %v4896_v17 = vld [vmem:[#allocation21_spill] sm:$0xff] }
 0x16e   : > { %4881 = vst [vmem:[#allocation11_spill] sm:$0xff] %v4110_v62  ;;  %v2067_v60 = vpack.c.bf16 %v2040_v43, %v2039_v31  ;;  %v1977_v36 = vadd.f32 %v3714_v30, %v1938_v26  ;;  %v1192_v53 = vrot.slane %v4110_v62, 7  ;;  %v4126_v42 = vmul.f32 %v3003_v21, %v4110_v62  ;;  %4889 = vst [vmem:[#allocation15_spill] sm:$0xff] %v4157_v46  ;;  %v3006_v3 = vld [vmem:[%s4683_s3] ss:$0 sm:$0xff] }
 0x16f   : > { %4882 = vst [vmem:[#allocation9_spill] sm:$0xff] %v4119_v6  ;;  %v1978_v59 = vadd.f32 %v3714_v30, %v1939_v22  ;;  %v805_v5 = vrot.slane %v4115_v34, 7  ;;  %v4885_v52 = vrot.slane %v4884_v7, 1  ;;  %v4142_v32 = vmul.f32 %v3297_v25, %v4110_v62  ;;  %v4912_v62 = vld [vmem:[#allocation50_spill] sm:$0xff] }
 0x170   : > { %4883 = vst [vmem:[#allocation26_spill] sm:$0xff] %v4126_v42  ;;  %2929 = vmatprep.mubr.bf16.mxu1 %v2067_v60  ;;  %v2009_v28 = vmax.f32 %v1977_v36, 0.0  ;;  %v4137_v56 = vsel %vm840_vm2, %v3146_v33, %v1192_v53  ;;  %v945_v58 = vmul.f32 %v3004_v49, %v4115_v34  ;;  %v4168_v8 = vmul.f32 %v3003_v21, %v4115_v34 }
 0x171   : > { %v1036_v41 = vsel %vm1027_vm3, %v4885_v52, %v3165_v39  ;;  %4886 = vst [vmem:[#allocation17_spill] sm:$0xff] %v4137_v56  ;;  %4887 = vst [vmem:[#allocation22_spill] sm:$0xff] %v4142_v32  ;;  %v2010_v50 = vmax.f32 %v1978_v59, 0.0  ;;  %v4147_v35 = vsel %vm840_vm2, %v3146_v33, %v805_v5  ;;  %v4161_v25 = vmul.f32 %v4157_v46, %v4137_v56 }
 0x172   : > { %4888 = vst [vmem:[#allocation27_spill] sm:$0xff] %v4147_v35  ;;  %v908_v38 = vmul.f32 %v3006_v3, %v4147_v35  ;;  %4891 = vst [vmem:[#allocation43_spill] sm:$0xff] %v4168_v8  ;;  %v1208_v31 = vrot.slane %v4119_v6, 7  ;;  %v2041_v43 = vmin.f32 %v2009_v28, 6.0  ;;  %v4173_v22 = vmul.f32 %v4157_v46, %v4147_v35 }
 0x173   : > { %4890 = vst [vmem:[#allocation19_spill] sm:$0xff] %v4161_v25  ;;  %v2042_v26 = vmin.f32 %v2010_v50, 6.0  ;;  %v4176_v60 = vmul.f32 %v3003_v21, %v4119_v6  ;;  %v4183_v52 = vmin.f32 %v643_v57, 6.0  ;;  %v4895_v11 = vrot.slane %v4884_v7, 1  ;;  %v4899_v25 = vld [vmem:[#allocation34_spill] sm:$0xff] }
 0x174   : > { %4892 = vst [vmem:[#allocation28_spill] sm:$0xff] %v4173_v22  ;;  %v4180_v36 = vsel %vm840_vm2, %v1192_v53, %v1208_v31  ;;  %v4897_v28 = vrot.slane %v4896_v17, 1  ;;  %v4191_v32 = vadd.f32 %v945_v58, %v908_v38  ;;  %v1082_v33 = vmul.f32 %v4069_v27, %v1036_v41  ;;  %v4901_v58 = vld [vmem:[#allocation38_spill] sm:$0xff]  ;;  %v4917_v22 = vld [vmem:[#allocation40_spill] sm:$0xff] }
 0x175   : > { %4893 = vst [vmem:[#allocation16_spill] sm:$0xff] %v4176_v60  ;;  %4894 = vst [vmem:[#allocation25_spill] sm:$0xff] %v4180_v36  ;;  %v2068_v42 = vpack.c.bf16 %v2042_v26, %v2041_v43  ;;  %v821_v53 = vrot.slane %v4183_v52, 7  ;;  %v946_v31 = vmul.f32 %v3004_v49, %v4183_v52  ;;  %v4199_v59 = vmul.f32 %v3003_v21, %v4183_v52  ;;  %v4902_v26 = vld [vmem:[#allocation54_spill] sm:$0xff]  ;;  %v4214_v21 = vld [vmem:[%s4683_s3 + $0x5] ss:$0 sm:$0xff] }
 0x176   : > { %v1052_v50 = vsel %vm1027_vm3, %v4897_v28, %v4895_v11  ;;  %v4900_v11 = vld [vmem:[#allocation41_spill] sm:$0xff]  ;;  %v1306_v38 = vadd.f32 %v4901_v58, %v4034_v10  ;;  %v1307_v28 = vadd.f32 %v4902_v26, %v4023_v12  ;;  %v1495_v49 = vmul.f32 %v4214_v21, %v1036_v41  ;;  %v4904_v10 = vld [vmem:[#allocation30_spill] sm:$0xff] }
 0x177   : > { %v1081_v60 = vmul.f32 %v4069_v27, %v1052_v50  ;;  %4898 = vst [vmem:[#allocation14_spill] sm:$0xff] %v4199_v59  ;;  %2930 = vmatmul.mubr.bf16.gmra.mrb[4].mxu1 %v2068_v42  ;;  %v1114_v43 = vadd.f32 %v1082_v33, %v4900_v11  ;;  %v4209_v36 = vsel %vm840_vm2, %v805_v5, %v821_v53  ;;  %v4221_v33 = vld [vmem:[%s4683_s3 + $0x6] ss:$0 sm:$0xff]  ;;  %v4907_v11 = vld [vmem:[#allocation48_spill] sm:$0xff]  ;;  %v4908_v26 = vld [vmem:[#allocation37_spill] sm:$0xff] }
 0x178   : > { %4903 = vst [vmem:[#allocation47_spill] sm:$0xff] %v4209_v36  ;;  %v1494_v42 = vmul.f32 %v4214_v21, %v1052_v50  ;;  %v1690_v12 = vmul.f32 %v4221_v33, %v4904_v10  ;;  %v909_v5 = vmul.f32 %v3006_v3, %v4209_v36  ;;  %v1376_v58 = vadd.f32 %v4907_v11, %v1307_v28  ;;  %v4237_v59 = vld [vmem:[%s4683_s3 + $0x7] ss:$0 sm:$0xff] }
 0x179   : > { %v1113_v56 = vadd.f32 %v1081_v60, %v4899_v25  ;;  %v4228_v25 = vmul.f32 %v4157_v46, %v4209_v36  ;;  %v4906_v60 = vld [vmem:[#allocation36_spill] sm:$0xff]  ;;  %v1691_v57 = vmul.f32 %v4221_v33, %v4908_v26  ;;  %v1759_v10 = vmul.f32 %v4237_v59, %v4896_v17 }
 0x17a   : > { %v1375_v53 = vadd.f32 %v4906_v60, %v1306_v38  ;;  %v1760_v3 = vmul.f32 %v4237_v59, %v4884_v7  ;;  %v1908_v46 = vmul.f32 %v3673_v47, %v1052_v50  ;;  %v4244_v8 = vadd.f32 %v946_v31, %v909_v5  ;;  %v4914_v31 = vld [vmem:[#allocation33_spill] sm:$0xff] }
 0x17b   : > { %4905 = vst [vmem:[#allocation23_spill] sm:$0xff] %v4228_v25  ;;  %v1525_v28 = vadd.f32 %v4113_v63, %v1376_v58  ;;  %v1909_v60 = vmul.f32 %v3673_v47, %v1036_v41  ;;  %v4910_v11 = vrot.slane %v3591_v20, 1  ;;  %v4913_v7 = vrot.slane %v4912_v62, 1  ;;  %v4915_v63 = vld [vmem:[#allocation42_spill] sm:$0xff] }
 0x17c   : > { %4909 = vst [vmem:[#allocation35_spill] sm:$0xff] %v4244_v8  ;;  %v1524_v38 = vadd.f32 %v4088_v18, %v1375_v53  ;;  %v1308_v18 = vadd.f32 %v4914_v31, %v4084_v19  ;;  %v1309_v5 = vadd.f32 %v4915_v63, %v4080_v1  ;;  %v1693_v31 = vmul.f32 %v4221_v33, %v3665_v14  ;;  %v4919_v14 = vld [vmem:[#allocation51_spill] sm:$0xff] }
 0x17d   : > { %v1037_v26 = vsel %vm1027_vm3, %v4910_v11, %v3165_v39  ;;  %v4911_v17 = vmov %v4910_v11  ;;  %v1723_v53 = vadd.f32 %v1691_v57, %v1525_v28  ;;  %v4916_v11 = vld [vmem:[#allocation31_spill] sm:$0xff]  ;;  %v1761_v63 = vmul.f32 %v4237_v59, %v4912_v62 }
 0x17e   : > { %v1053_v50 = vsel %vm1027_vm3, %v4913_v7, %v4911_v17  ;;  %v1722_v41 = vadd.f32 %v1690_v12, %v1524_v38  ;;  %v1084_v6 = vmul.f32 %v4069_v27, %v1037_v26  ;;  %v1377_v25 = vadd.f32 %v4916_v11, %v1308_v18  ;;  %v4918_v38 = vld [vmem:[#allocation58_spill] sm:$0xff] }
 0x17f   : > { %v1083_v58 = vmul.f32 %v4069_v27, %v1053_v50  ;;  %v1378_v36 = vadd.f32 %v4917_v22, %v1309_v5  ;;  %v1496_v35 = vmul.f32 %v4214_v21, %v1053_v50  ;;  %v1497_v17 = vmul.f32 %v4214_v21, %v1037_v26 }
 0x180   : > { %v1791_v7 = vadd.f32 %v1759_v10, %v1722_v41  ;;  %v1792_v8 = vadd.f32 %v1760_v3, %v1723_v53  ;;  %v1116_v1 = vadd.f32 %v1084_v6, %v3691_v24  ;;  %v1526_v12 = vadd.f32 %v1494_v42, %v1377_v25 }
 0x181   : > { %v1115_v19 = vadd.f32 %v1083_v58, %v3652_v16  ;;  %v1527_v57 = vadd.f32 %v1495_v49, %v1378_v36  ;;  %v1692_v28 = vmul.f32 %v4221_v33, %v4918_v38  ;;  %v1762_v10 = vmul.f32 %v4237_v59, %v3591_v20  ;;  %v4922_v49 = vld [vmem:[#allocation44_spill] sm:$0xff]  ;;  %v4924_v58 = vld [vmem:[#allocation63_spill] sm:$0xff]  ;;  %v4925_v38 = vld [vmem:[#allocation57_spill] sm:$0xff] }
 0x182   : > { %v1940_v18 = vadd.f32 %v1908_v46, %v1791_v7  ;;  %v1941_v22 = vadd.f32 %v1909_v60, %v1792_v8  ;;  %v1910_v24 = vmul.f32 %v3673_v47, %v1053_v50  ;;  %v1911_v6 = vmul.f32 %v3673_v47, %v1037_v26 }
 0x183   : > { %v1724_v3 = vadd.f32 %v1692_v28, %v1526_v12  ;;  %v1725_v16 = vadd.f32 %v1693_v31, %v1527_v57  ;;  %v4920_v46 = vrot.slane %v4919_v14, 1  ;;  %v4923_v20 = vrot.slane %v4922_v49, 1  ;;  %v4926_v31 = vld [vmem:[#allocation66_spill] sm:$0xff] }
 0x184   : > { %v1979_v36 = vadd.f32 %v3714_v30, %v1940_v18  ;;  %v1980_v42 = vadd.f32 %v3714_v30, %v1941_v22  ;;  %v1310_v11 = vadd.f32 %v4924_v58, %v1113_v56  ;;  %v1311_v7 = vadd.f32 %v3723_v2, %v1114_v43 }
 0x185   : > { %v1038_v8 = vsel %vm1027_vm3, %v4920_v46, %v3165_v39  ;;  %v4921_v62 = vmov %v4920_v46  ;;  %v1793_v60 = vadd.f32 %v1761_v63, %v1724_v3  ;;  %v1794_v50 = vadd.f32 %v1762_v10, %v1725_v16  ;;  %v4927_v10 = vld [vmem:[#allocation59_spill] sm:$0xff] }
 0x186   : > { %v1054_v25 = vsel %vm1027_vm3, %v4923_v20, %v4921_v62  ;;  %v1086_v5 = vmul.f32 %v4069_v27, %v1038_v8  ;;  %v2011_v41 = vmax.f32 %v1979_v36, 0.0  ;;  %v2012_v53 = vmax.f32 %v1980_v42, 0.0  ;;  %v4928_v16 = vld [vmem:[#allocation67_spill] sm:$0xff]  ;;  %v4929_v62 = vld [vmem:[#allocation52_spill] sm:$0xff] }
 0x187   : > { %v1085_v26 = vmul.f32 %v4069_v27, %v1054_v25  ;;  %v1942_v12 = vadd.f32 %v1910_v24, %v1793_v60  ;;  %v1943_v57 = vadd.f32 %v1911_v6, %v1794_v50  ;;  %v1379_v3 = vadd.f32 %v4927_v10, %v1310_v11 }
 0x188   : > { %v4303_v18 = vadd.f32 %v1086_v5, %v4926_v31  ;;  %v2043_v22 = vmin.f32 %v2011_v41, 6.0  ;;  %v2044_v63 = vmin.f32 %v2012_v53, 6.0  ;;  %v1380_v46 = vadd.f32 %v4928_v16, %v1311_v7 }
 0x189   : > { %v4300_v28 = vadd.f32 %v1085_v26, %v4925_v38  ;;  %v1981_v36 = vadd.f32 %v3714_v30, %v1942_v12  ;;  %v1982_v56 = vadd.f32 %v3714_v30, %v1943_v57  ;;  %v1498_v2 = vmul.f32 %v4214_v21, %v1054_v25  ;;  %v4930_v26 = vld [vmem:[#allocation61_spill] sm:$0xff] }
 0x18a   : > { %v1499_v43 = vmul.f32 %v4214_v21, %v1038_v8  ;;  %v2069_v24 = vpack.c.bf16 %v2044_v63, %v2043_v22  ;;  %v1528_v6 = vadd.f32 %v1496_v35, %v1379_v3  ;;  %v1529_v42 = vadd.f32 %v1497_v17, %v1380_v46  ;;  %v4935_v46 = vld [vmem:[#allocation65_spill] sm:$0xff] }
 0x18b   : > { %v1694_v20 = vmul.f32 %v4221_v33, %v4929_v62  ;;  %v2013_v60 = vmax.f32 %v1981_v36, 0.0  ;;  %v2014_v50 = vmax.f32 %v1982_v56, 0.0  ;;  %v1695_v5 = vmul.f32 %v4221_v33, %v4930_v26 }
 0x18c   : > { %v1763_v41 = vmul.f32 %v4237_v59, %v4922_v49  ;;  %2933 = vmatprep.mubr.bf16.mxu1 %v2069_v24  ;;  %v1764_v58 = vmul.f32 %v4237_v59, %v4919_v14  ;;  %v1912_v11 = vmul.f32 %v3673_v47, %v1054_v25  ;;  %v1913_v35 = vmul.f32 %v3673_v47, %v1038_v8  ;;  %v4934_v8 = vld [vmem:[#allocation55_spill] sm:$0xff] }
 0x18d   : > { %v1726_v53 = vadd.f32 %v1694_v20, %v1528_v6  ;;  %v2045_v17 = vmin.f32 %v2013_v60, 6.0  ;;  %v2046_v7 = vmin.f32 %v2014_v50, 6.0  ;;  %v1727_v12 = vadd.f32 %v1695_v5, %v1529_v42  ;;  %v4936_v6 = vld [vmem:[#allocation53_spill] sm:$0xff]  ;;  %v4937_v50 = vld [vmem:[#allocation64_spill] sm:$0xff] }
 0x18e   : > { %v4931_v57 = vrot.slane %v3771_v23, 1  ;;  %v4933_v22 = vrot.slane %v3734_v37, 1  ;;  %v1312_v63 = vadd.f32 %v4934_v8, %v1115_v19  ;;  %v1313_v36 = vadd.f32 %v4935_v46, %v1116_v1 }
 0x18f   : > { %v1795_v31 = vadd.f32 %v1763_v41, %v1726_v53  ;;  %v2070_v10 = vpack.c.bf16 %v2046_v7, %v2045_v17  ;;  %v1796_v3 = vadd.f32 %v1764_v58, %v1727_v12  ;;  %v1696_v1 = vmul.f32 %v4221_v33, %v3756_v9 }
 0x190   : > { %v1039_v38 = vsel %vm1027_vm3, %v4931_v57, %v3165_v39  ;;  %v4932_v49 = vmov %v4931_v57  ;;  %v1381_v42 = vadd.f32 %v4936_v6, %v1312_v63  ;;  %v1382_v19 = vadd.f32 %v4937_v50, %v1313_v36  ;;  %v4938_v57 = vld [vmem:[#allocation73_spill] sm:$0xff]  ;;  %v4944_v36 = vld [vmem:[#allocation72_spill] sm:$0xff]  ;;  %v4945_v6 = vld [vmem:[#allocation78_spill] sm:$0xff] }
 0x191   : > { %v1055_v14 = vsel %vm1027_vm3, %v4933_v22, %v4932_v49  ;;  %v1088_v25 = vmul.f32 %v4069_v27, %v1039_v38  ;;  %v1944_v56 = vadd.f32 %v1912_v11, %v1795_v31  ;;  %2934 = vmatmul.mubr.bf16.gmra.mrb[8].mxu1 %v2070_v10  ;;  %v1945_v20 = vadd.f32 %v1913_v35, %v1796_v3  ;;  %v4943_v10 = vld [vmem:[#allocation74_spill] sm:$0xff] }
 0x192   : > { %v1087_v16 = vmul.f32 %v4069_v27, %v1055_v14  ;;  %v1500_v62 = vmul.f32 %v4214_v21, %v1055_v14  ;;  %v1501_v26 = vmul.f32 %v4214_v21, %v1039_v38  ;;  %v1530_v41 = vadd.f32 %v1498_v2, %v1381_v42 }
 0x193   : > { %v4337_v24 = vadd.f32 %v1088_v25, %v3839_v15  ;;  %v1983_v5 = vadd.f32 %v3714_v30, %v1944_v56  ;;  %v1697_v15 = vmul.f32 %v4221_v33, %v3817_v61  ;;  %v1984_v53 = vadd.f32 %v3714_v30, %v1945_v20 }
 0x194   : > { %v1119_v60 = vadd.f32 %v1087_v16, %v3792_v44  ;;  %v1531_v58 = vadd.f32 %v1499_v43, %v1382_v19  ;;  %v1765_v11 = vmul.f32 %v4237_v59, %v3734_v37  ;;  %v1766_v44 = vmul.f32 %v4237_v59, %v3771_v23  ;;  %v4941_v37 = vld [vmem:[#allocation68_spill] sm:$0xff] }
 0x195   : > { %v2015_v35 = vmax.f32 %v1983_v5, 0.0  ;;  %v1728_v17 = vadd.f32 %v1696_v1, %v1530_v41  ;;  %v1914_v7 = vmul.f32 %v3673_v47, %v1055_v14  ;;  %v1915_v2 = vmul.f32 %v3673_v47, %v1039_v38  ;;  %v4946_v5 = vld [vmem:[#allocation75_spill] sm:$0xff]  ;;  %v4947_v1 = vld [vmem:[#allocation77_spill] sm:$0xff] }
 0x196   : > { %v2016_v12 = vmax.f32 %v1984_v53, 0.0  ;;  %v1729_v9 = vadd.f32 %v1697_v15, %v1531_v58  ;;  %v4939_v61 = vrot.slane %v4938_v57, 1  ;;  %v4942_v49 = vrot.slane %v4941_v37, 1 }
 0x197   : > { %v2047_v22 = vmin.f32 %v2015_v35, 6.0  ;;  %v1797_v25 = vadd.f32 %v1765_v11, %v1728_v17  ;;  %v1314_v3 = vadd.f32 %v4943_v10, %v4300_v28  ;;  %v1315_v16 = vadd.f32 %v3874_v45, %v4303_v18  ;;  %v4948_v45 = vld [vmem:[#allocation69_spill] sm:$0xff] }
 0x198   : > { %v1040_v43 = vsel %vm1027_vm3, %v4939_v61, %v3165_v39  ;;  %v4940_v31 = vmov %v4939_v61  ;;  %v2048_v8 = vmin.f32 %v2016_v12, 6.0  ;;  %v1798_v63 = vadd.f32 %v1766_v44, %v1729_v9 }
 0x199   : > { %v1056_v23 = vsel %vm1027_vm3, %v4942_v49, %v4940_v31  ;;  %v1090_v38 = vmul.f32 %v4069_v27, %v1040_v43  ;;  %v1946_v46 = vadd.f32 %v1914_v7, %v1797_v25  ;;  %v1383_v41 = vadd.f32 %v4946_v5, %v1314_v3  ;;  %v4954_v5 = vld [vmem:[#allocation76_spill] sm:$0xff] }
 0x19a   : > { %v1089_v14 = vmul.f32 %v4069_v27, %v1056_v23  ;;  %v1502_v20 = vmul.f32 %v4214_v21, %v1056_v23  ;;  %v2071_v50 = vpack.c.bf16 %v2048_v8, %v2047_v22  ;;  %v1947_v19 = vadd.f32 %v1915_v2, %v1798_v63 }
 0x19b   : > { %v4377_v42 = vadd.f32 %v1090_v38, %v4945_v6  ;;  %v1384_v15 = vadd.f32 %v4947_v1, %v1315_v16  ;;  %v1985_v28 = vadd.f32 %v3714_v30, %v1946_v46  ;;  %v1503_v53 = vmul.f32 %v4214_v21, %v1040_v43  ;;  %v4953_v16 = vld [vmem:[#allocation70_spill] sm:$0xff] }
 0x19c   : > { %v4374_v56 = vadd.f32 %v1089_v14, %v4944_v36  ;;  %v1698_v18 = vmul.f32 %v4221_v33, %v4948_v45  ;;  %v1699_v58 = vmul.f32 %v4221_v33, %v3808_v40  ;;  %2937 = vmatprep.mubr.bf16.mxu1 %v2071_v50  ;;  %v1986_v11 = vadd.f32 %v3714_v30, %v1947_v19 }
 0x19d   : > { %v1532_v44 = vadd.f32 %v1500_v62, %v1383_v41  ;;  %v1533_v35 = vadd.f32 %v1501_v26, %v1384_v15  ;;  %v1767_v17 = vmul.f32 %v4237_v59, %v4941_v37  ;;  %v2017_v7 = vmax.f32 %v1985_v28, 0.0 }
 0x19e   : > { %v1768_v2 = vmul.f32 %v4237_v59, %v4938_v57  ;;  %v1916_v12 = vmul.f32 %v3673_v47, %v1056_v23  ;;  %v1917_v9 = vmul.f32 %v3673_v47, %v1040_v43  ;;  %v2018_v61 = vmax.f32 %v1986_v11, 0.0  ;;  %v4952_v43 = vld [vmem:[#allocation71_spill] sm:$0xff] }
 0x19f   : > { %v1730_v31 = vadd.f32 %v1698_v18, %v1532_v44  ;;  %v1731_v49 = vadd.f32 %v1699_v58, %v1533_v35  ;;  %v4949_v40 = vrot.slane %v3965_v51, 1  ;;  %v2049_v26 = vmin.f32 %v2017_v7, 6.0  ;;  %v4433_v44 = vld [vmem:[%s4683_s3 + $0x8] ss:$0 sm:$0xff] }
 0x1a0   : > { %v4951_v22 = vrot.slane %v3931_v4, 1  ;;  %v1316_v25 = vadd.f32 %v4952_v43, %v1119_v60  ;;  %v2050_v14 = vmin.f32 %v2018_v61, 6.0  ;;  %v1317_v3 = vadd.f32 %v3870_v48, %v4337_v24 }
 0x1a1   : > { %v1041_v62 = vsel %vm1027_vm3, %v4949_v40, %v3165_v39  ;;  %v4950_v37 = vmov %v4949_v40  ;;  %v1799_v38 = vadd.f32 %v1767_v17, %v1730_v31  ;;  %v1800_v8 = vadd.f32 %v1768_v2, %v1731_v49  ;;  %v4960_v40 = vld [vmem:[#allocation20_spill] sm:$0xff] }
 0x1a2   : > { %v1057_v57 = vsel %vm1027_vm3, %v4951_v22, %v4950_v37  ;;  %v1092_v23 = vmul.f32 %v4069_v27, %v1041_v62  ;;  %v1385_v46 = vadd.f32 %v4953_v16, %v1316_v25  ;;  %v2072_v6 = vpack.c.bf16 %v2050_v14, %v2049_v26  ;;  %v4961_v22 = vld [vmem:[#allocation39_spill] sm:$0xff]  ;;  %v4963_v14 = vld [vmem:[#allocation8_spill] sm:$0xff] }
 0x1a3   : > { %v1091_v63 = vmul.f32 %v4069_v27, %v1057_v57  ;;  %v1504_v36 = vmul.f32 %v4214_v21, %v1057_v57  ;;  %v1948_v50 = vadd.f32 %v1916_v12, %v1799_v38  ;;  %v1949_v19 = vadd.f32 %v1917_v9, %v1800_v8  ;;  %v4964_v8 = vld [vmem:[#allocation7_spill] sm:$0xff] }
 0x1a4   : > { %v4410_v10 = vadd.f32 %v1092_v23, %v4038_v54  ;;  %v1386_v41 = vadd.f32 %v4954_v5, %v1317_v3  ;;  %v1505_v1 = vmul.f32 %v4214_v21, %v1041_v62  ;;  %v1534_v15 = vadd.f32 %v1502_v20, %v1385_v46  ;;  %2938 = vmatmul.mubr.bf16.gmra.mrb[12].mxu1 %v2072_v6  ;;  %v4962_v23 = vld [vmem:[#allocation46_spill] sm:$0xff]  ;;  %v4965_v6 = vld [vmem:[#allocation32_spill] sm:$0xff]  ;;  %v4966_v5 = vld [vmem:[#allocation13_spill] sm:$0xff] }
 0x1a5   : > { %v1123_v60 = vadd.f32 %v1091_v63, %v3987_v0  ;;  %v1700_v54 = vmul.f32 %v4221_v33, %v3957_v13  ;;  %v1987_v48 = vadd.f32 %v3714_v30, %v1948_v50  ;;  %v1988_v24 = vadd.f32 %v3714_v30, %v1949_v19 }
 0x1a6   : > { %v1701_v28 = vmul.f32 %v4221_v33, %v4012_v55  ;;  %v1769_v45 = vmul.f32 %v4237_v59, %v3931_v4  ;;  %v1535_v0 = vadd.f32 %v1503_v53, %v1386_v41  ;;  %v1770_v58 = vmul.f32 %v4237_v59, %v3965_v51  ;;  %v4955_v55 = vld [vmem:[#allocation12_spill] sm:$0xff] }
 0x1a7   : > { %v1732_v18 = vadd.f32 %v1700_v54, %v1534_v15  ;;  %v1918_v20 = vmul.f32 %v3673_v47, %v1057_v57  ;;  %v2019_v11 = vmax.f32 %v1987_v48, 0.0  ;;  %v2020_v13 = vmax.f32 %v1988_v24, 0.0  ;;  %v4958_v47 = vld [vmem:[#allocation6_spill] sm:$0xff]  ;;  %v4469_v48 = vld [vmem:[%s4684_s4] ss:$0 sm:$0xff] }
 0x1a8   : > { %v1919_v35 = vmul.f32 %v4433_v44, %v1041_v62  ;;  %v4956_v17 = vrot.slane %v4955_v55, 1  ;;  %v1733_v53 = vadd.f32 %v1701_v28, %v1535_v0  ;;  %v4959_v2 = vrot.slane %v4958_v47, 1 }
 0x1a9   : > { %v1801_v7 = vadd.f32 %v1769_v45, %v1732_v18  ;;  %v2051_v61 = vmin.f32 %v2019_v11, 6.0  ;;  %v2052_v31 = vmin.f32 %v2020_v13, 6.0  ;;  %v1318_v62 = vadd.f32 %v4960_v40, %v4374_v56 }
 0x1aa   : > { %v1042_v4 = vsel %vm1027_vm3, %v4956_v17, %v3165_v39  ;;  %v4957_v51 = vmov %v4956_v17  ;;  %v1802_v26 = vadd.f32 %v1770_v58, %v1733_v53  ;;  %v1319_v43 = vadd.f32 %v4962_v23, %v4377_v42  ;;  %v4967_v42 = vld [vmem:[#allocation24_spill] sm:$0xff] }
 0x1ab   : > { %v1058_v12 = vsel %vm1027_vm3, %v4959_v2, %v4957_v51  ;;  %v1094_v9 = vmul.f32 %v4069_v27, %v1042_v4  ;;  %v1950_v37 = vadd.f32 %v1918_v20, %v1801_v7  ;;  %v2073_v25 = vpack.c.bf16 %v2052_v31, %v2051_v61  ;;  %v4971_v51 = vld [vmem:[#allocation5_spill] sm:$0xff] }
 0x1ac   : > { %v1093_v49 = vmul.f32 %v4069_v27, %v1058_v12  ;;  %v1387_v63 = vadd.f32 %v4964_v8, %v1318_v62  ;;  %v1506_v3 = vmul.f32 %v4214_v21, %v1058_v12  ;;  %v1951_v16 = vadd.f32 %v1919_v35, %v1802_v26  ;;  %v4973_v62 = vld [vmem:[#allocation35_spill] sm:$0xff] }
 0x1ad   : > { %v1126_v57 = vadd.f32 %v1094_v9, %v4961_v22  ;;  %v1989_v46 = vadd.f32 %v3714_v30, %v1950_v37  ;;  %v1388_v50 = vadd.f32 %v4965_v6, %v1319_v43  ;;  %v1507_v56 = vmul.f32 %v4214_v21, %v1042_v4  ;;  %2941 = vmatprep.mubr.bf16.mxu1 %v2073_v25  ;;  %v4972_v9 = vld [vmem:[#allocation45_spill] sm:$0xff]  ;;  %v4974_v37 = vld [vmem:[#allocation18_spill] sm:$0xff] }
 0x1ae   : > { %v1125_v38 = vadd.f32 %v1093_v49, %v4963_v14  ;;  %v1536_v19 = vadd.f32 %v1504_v36, %v1387_v63  ;;  %v1702_v41 = vmul.f32 %v4221_v33, %v4966_v5  ;;  %v1703_v15 = vmul.f32 %v4221_v33, %v4967_v42  ;;  %v4975_v25 = vld [vmem:[#allocation10_spill] sm:$0xff]  ;;  %v4976_v63 = vld [vmem:[#allocation27_spill] sm:$0xff] }
 0x1af   : > { %v1771_v54 = vmul.f32 %v4237_v59, %v4958_v47  ;;  %v1990_v30 = vadd.f32 %v4469_v48, %v1951_v16  ;;  %v2021_v24 = vmax.f32 %v1989_v46, 0.0  ;;  %v1537_v28 = vadd.f32 %v1505_v1, %v1388_v50  ;;  %v4977_v16 = vld [vmem:[#allocation47_spill] sm:$0xff] }
 0x1b0   : > { %v1772_v36 = vmul.f32 %v4237_v59, %v4955_v55  ;;  %v1734_v45 = vadd.f32 %v1702_v41, %v1536_v19  ;;  %v1920_v0 = vmul.f32 %v4433_v44, %v1058_v12  ;;  %v1921_v18 = vmul.f32 %v4433_v44, %v1042_v4 }
 0x1b1   : > { %v4968_v58 = vrot.slane %v4183_v52, 1  ;;  %v2022_v11 = vmax.f32 %v1990_v30, 0.0  ;;  %v2053_v13 = vmin.f32 %v2021_v24, 6.0  ;;  %v1735_v35 = vadd.f32 %v1703_v15, %v1537_v28  ;;  %v4978_v30 = vld [vmem:[#allocation28_spill] sm:$0xff]  ;;  %v4979_v28 = vld [vmem:[#allocation23_spill] sm:$0xff] }
 0x1b2   : > { %v4970_v1 = vrot.slane %v4115_v34, 1  ;;  %v1803_v53 = vadd.f32 %v1771_v54, %v1734_v45  ;;  %v1320_v47 = vadd.f32 %v4971_v51, %v1123_v60  ;;  %v1321_v61 = vadd.f32 %v4972_v9, %v4410_v10 }
 0x1b3   : > { %v1043_v20 = vsel %vm1027_vm3, %v4968_v58, %v3165_v39  ;;  %v4969_v17 = vmov %v4968_v58  ;;  %v2054_v2 = vmin.f32 %v2022_v11, 6.0  ;;  %v1804_v12 = vadd.f32 %v1772_v36, %v1735_v35  ;;  %v4983_v58 = vld [vmem:[#allocation11_spill] sm:$0xff] }
 0x1b4   : > { %v1059_v55 = vsel %vm1027_vm3, %v4970_v1, %v4969_v17  ;;  %v1096_v4 = vmul.f32 %v4069_v27, %v1043_v20  ;;  %v1952_v49 = vadd.f32 %v1920_v0, %v1803_v53  ;;  %v1389_v22 = vadd.f32 %v4974_v37, %v1320_v47  ;;  %v4980_v0 = vld [vmem:[#allocation9_spill] sm:$0xff]  ;;  %v4988_v53 = vld [vmem:[#allocation15_spill] sm:$0xff] }
 0x1b5   : > { %v1095_v7 = vmul.f32 %v4069_v27, %v1059_v55  ;;  %v1508_v31 = vmul.f32 %v4214_v21, %v1059_v55  ;;  %v2074_v23 = vpack.c.bf16 %v2054_v2, %v2053_v13  ;;  %v1953_v43 = vadd.f32 %v1921_v18, %v1804_v12  ;;  %v4989_v47 = vld [vmem:[#allocation17_spill] sm:$0xff] }
 0x1b6   : > { %v1128_v26 = vadd.f32 %v1096_v4, %v4973_v62  ;;  %v1390_v27 = vadd.f32 %v4975_v25, %v1321_v61  ;;  %v1509_v60 = vmul.f32 %v4214_v21, %v1043_v20  ;;  %v1991_v14 = vadd.f32 %v4469_v48, %v1952_v49  ;;  %v4990_v25 = vld [vmem:[#allocation19_spill] sm:$0xff] }
 0x1b7   : > { %v1127_v40 = vadd.f32 %v1095_v7, %v4191_v32  ;;  %v1538_v8 = vadd.f32 %v1506_v3, %v1389_v22  ;;  %v1704_v10 = vmul.f32 %v4221_v33, %v4976_v63  ;;  %v1705_v46 = vmul.f32 %v4221_v33, %v4977_v16  ;;  %2942 = vmatmul.mubr.bf16.gmra.mrb[16].mxu1 %v2074_v23 }
 0x1b8   : > { %v1992_v32 = vadd.f32 %v4469_v48, %v1953_v43  ;;  %v1539_v6 = vadd.f32 %v1507_v56, %v1390_v27  ;;  %v1773_v50 = vmul.f32 %v4237_v59, %v4115_v34  ;;  %v1774_v19 = vmul.f32 %v4237_v59, %v4183_v52 }
 0x1b9   : > { %v2023_v5 = vmax.f32 %v1991_v14, 0.0  ;;  %v1736_v41 = vadd.f32 %v1704_v10, %v1538_v8  ;;  %v1922_v3 = vmul.f32 %v4433_v44, %v1059_v55  ;;  %v1923_v42 = vmul.f32 %v4433_v44, %v1043_v20  ;;  %v4987_v55 = vld [vmem:[#allocation25_spill] sm:$0xff] }
 0x1ba   : > { %v2024_v15 = vmax.f32 %v1992_v32, 0.0  ;;  %v1737_v54 = vadd.f32 %v1705_v46, %v1539_v6  ;;  %v1322_v24 = vadd.f32 %v4978_v30, %v1125_v38  ;;  %v1323_v36 = vadd.f32 %v4979_v28, %v1126_v57  ;;  %v4985_v38 = vld [vmem:[#allocation43_spill] sm:$0xff]  ;;  %v4986_v57 = vld [vmem:[#allocation14_spill] sm:$0xff] }
 0x1bb   : > { %v2055_v45 = vmin.f32 %v2023_v5, 6.0  ;;  %v1805_v56 = vadd.f32 %v1773_v50, %v1736_v41  ;;  %v4981_v34 = vrot.slane %v4980_v0, 1  ;;  %v4984_v11 = vrot.slane %v4983_v58, 1  ;;  %v4992_v46 = vld [vmem:[#allocation22_spill] sm:$0xff]  ;;  %v4994_v50 = vld [vmem:[#allocation16_spill] sm:$0xff] }
 0x1bc   : > { %v2056_v13 = vmin.f32 %v2024_v15, 6.0  ;;  %v1806_v35 = vadd.f32 %v1774_v19, %v1737_v54  ;;  %v1391_v17 = vadd.f32 %v4985_v38, %v1322_v24  ;;  %v1392_v1 = vadd.f32 %v4986_v57, %v1323_v36  ;;  %v4993_v32 = vld [vmem:[#allocation26_spill] sm:$0xff] }
 0x1bd   : > { %v1458_v52 = vsel %vm1027_vm3, %v4981_v34, %v3165_v39  ;;  %v4982_v18 = vmov %v4981_v34  ;;  %v1293_v7 = vmul.f32 %v4988_v53, %v4987_v55  ;;  %v1776_v4 = vmul.f32 %v4237_v59, %v4980_v0  ;;  %v2815_v53 = vld [vmem:[%s3079_s8 + $0x8] sm:$0xff]  }
 0x1be   : > { %v1474_v20 = vsel %vm1027_vm3, %v4984_v11, %v4982_v18  ;;  %v1954_v51 = vadd.f32 %v1922_v3, %v1805_v56  ;;  %v1706_v2 = vmul.f32 %v4221_v33, %v4989_v47  ;;  %v2075_v12 = vpack.c.bf16 %v2056_v13, %v2055_v45 }
 0x1bf   : > { %v1955_v9 = vadd.f32 %v1923_v42, %v1806_v35  ;;  %v1540_v29 = vadd.f32 %v1508_v31, %v1391_v17  ;;  %v1541_v61 = vadd.f32 %v1509_v60, %v1392_v1  ;;  %v1510_v62 = vmul.f32 %v4214_v21, %v1474_v20  ;;  %v4991_v60 = vld [vmem:[#allocation4_spill] sm:$0xff] }
 0x1c0   : > { %v1993_v49 = vadd.f32 %v4469_v48, %v1954_v51  ;;  %v1511_v37 = vmul.f32 %v4214_v21, %v1458_v52  ;;  %v1707_v22 = vmul.f32 %v4221_v33, %v4987_v55  ;;  %2945 = vmatprep.mubr.bf16.mxu1 %v2075_v12  ;;  %v1324_v27 = vadd.f32 %v4990_v25, %v1127_v40  ;;  %v4995_v40 = vld [vmem:[#allocation3_spill] sm:$0xff] }
 0x1c1   : > { %v1994_v23 = vadd.f32 %v4469_v48, %v1955_v9  ;;  %v1738_v43 = vadd.f32 %v1706_v2, %v1540_v29  ;;  %v1325_v14 = vadd.f32 %v1293_v7, %v1128_v26  ;;  %v1924_v31 = vmul.f32 %v4433_v44, %v1474_v20  ;;  %v2752_v7 = vld [vmem:[%s3079_s8] sm:$0xff]  }
 0x1c2   : > { %v2025_v8 = vmax.f32 %v1993_v49, 0.0  ;;  %v1739_v63 = vadd.f32 %v1707_v22, %v1541_v61  ;;  %v1708_v10 = vmul.f32 %v4221_v33, %v4991_v60  ;;  %v1393_v6 = vadd.f32 %v4993_v32, %v1324_v27  ;;  %v2817_v60 = vld [vmem:[%s3079_s8 + $0x18] sm:$0xff]  }
 0x1c3   : > { %v2026_v16 = vmax.f32 %v1994_v23, 0.0  ;;  %v1807_v21 = vadd.f32 %v4992_v46, %v1738_v43  ;;  %v1394_v19 = vadd.f32 %v4994_v50, %v1325_v14  ;;  %v1925_v3 = vmul.f32 %v4433_v44, %v1458_v52 }
 0x1c4   : > { %v2057_v5 = vmin.f32 %v2025_v8, 6.0  ;;  %v1808_v41 = vadd.f32 %v1776_v4, %v1739_v63  ;;  %v1777_v26 = vmul.f32 %v4237_v59, %v4995_v40  ;;  %v1542_v54 = vadd.f32 %v1510_v62, %v1393_v6  ;;  %v4558_v4 = vld [vmem:[%s4686_s6] ss:$0 sm:$0xff] }
 0x1c5   : > { %v2058_v42 = vmin.f32 %v2026_v16, 6.0  ;;  %v1956_v15 = vadd.f32 %v1924_v31, %v1807_v21  ;;  %v1543_v30 = vadd.f32 %v1511_v37, %v1394_v19  ;;  %v1926_v33 = vmul.f32 %v4433_v44, %v3165_v39 }
 0x1c6   : > { %v1957_v24 = vadd.f32 %v1925_v3, %v1808_v41  ;;  %v1740_v45 = vadd.f32 %v1708_v10, %v1542_v54  ;;  %v2757_v51 = vunpack.c.l.bf16 %v2815_v53  ;;  %v2753_v2 = vunpack.c.l.bf16 %v2752_v7 }
 0x1c7   : > { %v2076_v28 = vpack.c.bf16 %v2058_v42, %v2057_v5  ;;  %v1995_v36 = vadd.f32 %v4469_v48, %v1956_v15  ;;  %v1741_v56 = vadd.f32 %v1708_v10, %v1543_v30  ;;  %v2758_v9 = vunpack.c.h.bf16 %v2815_v53  ;;  %v2816_v10 = vld [vmem:[%s3079_s8 + $0x10] sm:$0xff]  }
 0x1c8   : > { %v1996_v0 = vadd.f32 %v4469_v48, %v1957_v24  ;;  %v1809_v52 = vadd.f32 %v1777_v26, %v1740_v45  ;;  %v2754_v49 = vunpack.c.h.bf16 %v2752_v7  ;;  %v2765_v16 = vunpack.c.l.bf16 %v2817_v60  ;;  %v2819_v45 = vld [vmem:[%s3079_s8 + $0x28] sm:$0xff]  }
 0x1c9   : > { %2946 = vmatmul.mubr.bf16.gmra.mrb[20].mxu1 %v2076_v28  ;;  %v2027_v34 = vmax.f32 %v1995_v36, 0.0  ;;  %v1810_v18 = vadd.f32 %v1777_v26, %v1741_v56  ;;  %v2761_v21 = vunpack.c.l.bf16 %v2816_v10  ;;  %v2766_v50 = vunpack.c.h.bf16 %v2817_v60  ;;  %v2818_v56 = vld [vmem:[%s3079_s8 + $0x20] sm:$0xff]  }
 0x1ca   : > { %v2028_v59 = vmax.f32 %v1996_v0, 0.0  ;;  %v1958_v58 = vadd.f32 %v1926_v33, %v1809_v52  ;;  %v2762_v41 = vunpack.c.h.bf16 %v2816_v10  ;;  %v2773_v0 = vunpack.c.l.bf16 %v2819_v45 }
 0x1cb   : > { %v1959_v11 = vadd.f32 %v1926_v33, %v1810_v18  ;;  %v2059_v20 = vmin.f32 %v2027_v34, 6.0  ;;  %v2769_v52 = vunpack.c.l.bf16 %v2818_v56 }
 0x1cc   : > { %v2060_v13 = vmin.f32 %v2028_v59, 6.0  ;;  %v1997_v39 = vadd.f32 %v4469_v48, %v1958_v58  ;;  %v2774_v58 = vunpack.c.h.bf16 %v2819_v45 }
 0x1cd   : > { %v1998_v44 = vadd.f32 %v4469_v48, %v1959_v11 }
 0x1ce   : > { %v2077_v35 = vpack.c.bf16 %v2060_v13, %v2059_v20  ;;  %v2029_v38 = vmax.f32 %v1997_v39, 0.0  ;;  %v2770_v13 = vunpack.c.h.bf16 %v2818_v56 }
 0x1cf   : > { %v2030_v17 = vmax.f32 %v1998_v44, 0.0 }
 0x1d0   : > { %2949 = vmatprep.mubr.bf16.mxu1 %v2077_v35  ;;  %v2061_v57 = vmin.f32 %v2029_v38, 6.0 }
 0x1d1   : > { %v2062_v1 = vmin.f32 %v2030_v17, 6.0 }
 0x1d3   : > { %v2078_v55 = vpack.c.bf16 %v2062_v1, %v2061_v57 }
 0x1d5   : > { %2950 = vmatmul.mubr.bf16.gmra.mrb[24].mxu1 %v2078_v55 }
 0x20a   : > { %v2923_v47 = vpop.f32.mrb[32].mxu0 }
 0x20b   : > { %v2193_v48 = vadd.f32 %v2923_v47, %v4558_v4  ;;  %v2184_v12 = vpop.f32.mrb[33].mxu0  ;;  %v2821_v47 = vld [vmem:[%s3079_s8 + $0x38] sm:$0xff]  }
 0x20c   : > { %v2185_v29 = vadd.f32 %v4558_v4, %v2184_v12  ;;  %v2924_v61 = vpop.f32.mrb[34].mxu0 }
 0x20d   : > { %v2377_v62 = vadd.f32 %v2757_v51, %v2193_v48  ;;  %v2196_v37 = vadd.f32 %v2924_v61, %v4558_v4  ;;  %v2187_v22 = vpop.f32.mrb[35].mxu0  ;;  %v2781_v48 = vunpack.c.l.bf16 %v2821_v47 }
 0x20e   : > { %v2375_v23 = vadd.f32 %v2753_v2, %v2185_v29  ;;  %v2188_v43 = vadd.f32 %v4558_v4, %v2187_v22  ;;  %v2820_v2 = vld [vmem:[%s3079_s8 + $0x30] sm:$0xff]  }
 0x20f   : > { %v2721_v25 = vpack.c.bf16 %v2377_v62, %v2377_v62  ;;  %v2378_v27 = vadd.f32 %v2758_v9, %v2196_v37  ;;  %v2777_v9 = vunpack.c.l.bf16 %v2820_v2  ;;  %v2778_v22 = vunpack.c.h.bf16 %v2820_v2 }
 0x210   : > { %v2719_v14 = vpack.c.bf16 %v2375_v23, %v2375_v23  ;;  %v2376_v8 = vadd.f32 %v2754_v49, %v2188_v43  ;;  %v2782_v49 = vunpack.c.h.bf16 %v2821_v47 }
 0x211   : > { %2538 = vst.msk [vmem:[%s4568_s14 + $0x8] sm:$0xf] %vm2535_vm4, %v2721_v25  ;;  %v2722_v63 = vpack.c.bf16 %v2378_v27, %v2378_v27 }
 0x212   : > { %2536 = vst.msk [vmem:[%s4568_s14] sm:$0xf] %vm2535_vm4, %v2719_v14  ;;  %v2720_v31 = vpack.c.bf16 %v2376_v8, %v2376_v8 }
 0x213   : > { %2539 = vst.msk [vmem:[%s4568_s14 + $0xc] sm:$0xf] %vm2535_vm4, %v2722_v63 }
 0x214   : > { %2537 = vst.msk [vmem:[%s4568_s14 + $0x4] sm:$0xf] %vm2535_vm4, %v2720_v31 }
 0x22b   : > { %v2927_v46 = vpop.f32.mrb[0].mxu1 }
 0x22c   : > { %v2209_v32 = vadd.f32 %v2927_v46, %v4558_v4  ;;  %v2200_v6 = vpop.f32.mrb[1].mxu1  ;;  %v2823_v46 = vld [vmem:[%s3079_s8 + $0x48] sm:$0xff]  }
 0x22d   : > { %v2201_v19 = vadd.f32 %v4558_v4, %v2200_v6  ;;  %v2928_v5 = vpop.f32.mrb[2].mxu1 }
 0x22e   : > { %v2381_v3 = vadd.f32 %v2765_v16, %v2209_v32  ;;  %v2212_v40 = vadd.f32 %v2928_v5, %v4558_v4  ;;  %v2203_v26 = vpop.f32.mrb[3].mxu1  ;;  %v2789_v32 = vunpack.c.l.bf16 %v2823_v46 }
 0x22f   : > { %v2379_v42 = vadd.f32 %v2761_v21, %v2201_v19  ;;  %v2204_v15 = vadd.f32 %v4558_v4, %v2203_v26  ;;  %v2822_v21 = vld [vmem:[%s3079_s8 + $0x40] sm:$0xff]  }
 0x230   : > { %v2725_v54 = vpack.c.bf16 %v2381_v3, %v2381_v3  ;;  %v2382_v30 = vadd.f32 %v2766_v50, %v2212_v40  ;;  %v2785_v50 = vunpack.c.l.bf16 %v2822_v21  ;;  %v2786_v26 = vunpack.c.h.bf16 %v2822_v21 }
 0x231   : > { %v2723_v24 = vpack.c.bf16 %v2379_v42, %v2379_v42  ;;  %v2380_v33 = vadd.f32 %v2762_v41, %v2204_v15  ;;  %v2790_v41 = vunpack.c.h.bf16 %v2823_v46 }
 0x232   : > { %2542 = vst.msk [vmem:[%s4568_s14 + $0x18] sm:$0xf] %vm2535_vm4, %v2725_v54  ;;  %v2726_v28 = vpack.c.bf16 %v2382_v30, %v2382_v30 }
 0x233   : > { %2540 = vst.msk [vmem:[%s4568_s14 + $0x10] sm:$0xf] %vm2535_vm4, %v2723_v24  ;;  %v2724_v36 = vpack.c.bf16 %v2380_v33, %v2380_v33 }
 0x234   : > { %2543 = vst.msk [vmem:[%s4568_s14 + $0x1c] sm:$0xf] %vm2535_vm4, %v2726_v28 }
 0x235   : > { %2541 = vst.msk [vmem:[%s4568_s14 + $0x14] sm:$0xf] %vm2535_vm4, %v2724_v36 }
 0x24a   : > { %v2931_v34 = vpop.f32.mrb[4].mxu1 }
 0x24b   : > { %v2225_v18 = vadd.f32 %v2931_v34, %v4558_v4  ;;  %v2216_v59 = vpop.f32.mrb[5].mxu1  ;;  %v2825_v34 = vld [vmem:[%s3079_s8 + $0x58] sm:$0xff]  }
 0x24c   : > { %v2217_v11 = vadd.f32 %v4558_v4, %v2216_v59  ;;  %v2932_v20 = vpop.f32.mrb[6].mxu1 }
 0x24d   : > { %v2385_v39 = vadd.f32 %v2773_v0, %v2225_v18  ;;  %v2228_v44 = vadd.f32 %v2932_v20, %v4558_v4  ;;  %v2219_v35 = vpop.f32.mrb[7].mxu1  ;;  %v2797_v18 = vunpack.c.l.bf16 %v2825_v34 }
 0x24e   : > { %v2383_v38 = vadd.f32 %v2769_v52, %v2217_v11  ;;  %v2220_v17 = vadd.f32 %v4558_v4, %v2219_v35  ;;  %v2824_v52 = vld [vmem:[%s3079_s8 + $0x50] sm:$0xff]  }
 0x24f   : > { %v2729_v57 = vpack.c.bf16 %v2385_v39, %v2385_v39  ;;  %v2386_v1 = vadd.f32 %v2774_v58, %v2228_v44  ;;  %v2793_v58 = vunpack.c.l.bf16 %v2824_v52  ;;  %v2794_v35 = vunpack.c.h.bf16 %v2824_v52 }
 0x250   : > { %v2727_v55 = vpack.c.bf16 %v2383_v38, %v2383_v38  ;;  %v2384_v53 = vadd.f32 %v2770_v13, %v2220_v17  ;;  %v2798_v13 = vunpack.c.h.bf16 %v2825_v34 }
 0x251   : > { %2546 = vst.msk [vmem:[%s4568_s14 + $0x28] sm:$0xf] %vm2535_vm4, %v2729_v57  ;;  %v2730_v7 = vpack.c.bf16 %v2386_v1, %v2386_v1 }
 0x252   : > { %2544 = vst.msk [vmem:[%s4568_s14 + $0x20] sm:$0xf] %vm2535_vm4, %v2727_v55  ;;  %v2728_v51 = vpack.c.bf16 %v2384_v53, %v2384_v53 }
 0x253   : > { %2547 = vst.msk [vmem:[%s4568_s14 + $0x2c] sm:$0xf] %vm2535_vm4, %v2730_v7 }
 0x254   : > { %2545 = vst.msk [vmem:[%s4568_s14 + $0x24] sm:$0xf] %vm2535_vm4, %v2728_v51 }
 0x264   : > { %v2935_v12 = vpop.f32.mrb[8].mxu1 }
 0x265   : > { %v2241_v29 = vadd.f32 %v2935_v12, %v4558_v4  ;;  %v2232_v61 = vpop.f32.mrb[9].mxu1  ;;  %v2827_v12 = vld [vmem:[%s3079_s8 + $0x68] sm:$0xff]  }
 0x266   : > { %v2233_v62 = vadd.f32 %v4558_v4, %v2232_v61  ;;  %v2936_v37 = vpop.f32.mrb[10].mxu1 }
 0x267   : > { %v2389_v23 = vadd.f32 %v2781_v48, %v2241_v29  ;;  %v2244_v43 = vadd.f32 %v2936_v37, %v4558_v4  ;;  %v2235_v25 = vpop.f32.mrb[11].mxu1  ;;  %v2805_v29 = vunpack.c.l.bf16 %v2827_v12 }
 0x268   : > { %v2387_v27 = vadd.f32 %v2777_v9, %v2233_v62  ;;  %v2236_v14 = vadd.f32 %v4558_v4, %v2235_v25  ;;  %v2826_v9 = vld [vmem:[%s3079_s8 + $0x60] sm:$0xff]  }
 0x269   : > { %v2733_v8 = vpack.c.bf16 %v2389_v23, %v2389_v23  ;;  %v2390_v63 = vadd.f32 %v2782_v49, %v2244_v43  ;;  %v2801_v49 = vunpack.c.l.bf16 %v2826_v9  ;;  %v2802_v25 = vunpack.c.h.bf16 %v2826_v9 }
 0x26a   : > { %v2731_v31 = vpack.c.bf16 %v2387_v27, %v2387_v27  ;;  %v2388_v60 = vadd.f32 %v2778_v22, %v2236_v14  ;;  %v2806_v22 = vunpack.c.h.bf16 %v2827_v12 }
 0x26b   : > { %2550 = vst.msk [vmem:[%s4568_s14 + $0x38] sm:$0xf] %vm2535_vm4, %v2733_v8  ;;  %v2734_v10 = vpack.c.bf16 %v2390_v63, %v2390_v63 }
 0x26c   : > { %2548 = vst.msk [vmem:[%s4568_s14 + $0x30] sm:$0xf] %vm2535_vm4, %v2731_v31  ;;  %v2732_v16 = vpack.c.bf16 %v2388_v60, %v2388_v60 }
 0x26d   : > { %2551 = vst.msk [vmem:[%s4568_s14 + $0x3c] sm:$0xf] %vm2535_vm4, %v2734_v10 }
 0x26e   : > { %2549 = vst.msk [vmem:[%s4568_s14 + $0x34] sm:$0xf] %vm2535_vm4, %v2732_v16 }
 0x277   : > { %v2939_v6 = vpop.f32.mrb[12].mxu1 }
 0x278   : > { %v2257_v19 = vadd.f32 %v2939_v6, %v4558_v4  ;;  %v2248_v5 = vpop.f32.mrb[13].mxu1  ;;  %v2829_v6 = vld [vmem:[%s3079_s8 + $0x78] sm:$0xff]  }
 0x279   : > { %v2249_v3 = vadd.f32 %v4558_v4, %v2248_v5  ;;  %v2940_v40 = vpop.f32.mrb[14].mxu1 }
 0x27a   : > { %v2393_v42 = vadd.f32 %v2789_v32, %v2257_v19  ;;  %v2260_v15 = vadd.f32 %v2940_v40, %v4558_v4  ;;  %v2251_v54 = vpop.f32.mrb[15].mxu1  ;;  %v2813_v19 = vunpack.c.l.bf16 %v2829_v6 }
 0x27b   : > { %v2391_v30 = vadd.f32 %v2785_v50, %v2249_v3  ;;  %v2252_v24 = vadd.f32 %v4558_v4, %v2251_v54  ;;  %v2828_v50 = vld [vmem:[%s3079_s8 + $0x70] sm:$0xff]  }
 0x27c   : > { %v2737_v33 = vpack.c.bf16 %v2393_v42, %v2393_v42  ;;  %v2394_v28 = vadd.f32 %v2790_v41, %v2260_v15  ;;  %v2809_v41 = vunpack.c.l.bf16 %v2828_v50  ;;  %v2810_v54 = vunpack.c.h.bf16 %v2828_v50 }
 0x27d   : > { %v2735_v36 = vpack.c.bf16 %v2391_v30, %v2391_v30  ;;  %v2392_v45 = vadd.f32 %v2786_v26, %v2252_v24  ;;  %v2814_v26 = vunpack.c.h.bf16 %v2829_v6 }
 0x27e   : > { %2554 = vst.msk [vmem:[%s4568_s14 + $0x48] sm:$0xf] %vm2535_vm4, %v2737_v33  ;;  %v2738_v56 = vpack.c.bf16 %v2394_v28, %v2394_v28 }
 0x27f   : > { %2552 = vst.msk [vmem:[%s4568_s14 + $0x40] sm:$0xf] %vm2535_vm4, %v2735_v36  ;;  %v2736_v0 = vpack.c.bf16 %v2392_v45, %v2392_v45 }
 0x280   : > { %2555 = vst.msk [vmem:[%s4568_s14 + $0x4c] sm:$0xf] %vm2535_vm4, %v2738_v56 }
 0x281   : > { %2553 = vst.msk [vmem:[%s4568_s14 + $0x44] sm:$0xf] %vm2535_vm4, %v2736_v0 }
 0x28a   : > { %v2943_v59 = vpop.f32.mrb[16].mxu1 }
 0x28b   : > { %v2273_v11 = vadd.f32 %v2943_v59, %v4558_v4  ;;  %v2264_v20 = vpop.f32.mrb[17].mxu1 }
 0x28c   : > { %v2265_v39 = vadd.f32 %v4558_v4, %v2264_v20  ;;  %v2944_v44 = vpop.f32.mrb[18].mxu1 }
 0x28d   : > { %v2397_v38 = vadd.f32 %v2797_v18, %v2273_v11  ;;  %v2276_v17 = vadd.f32 %v2944_v44, %v4558_v4  ;;  %v2267_v57 = vpop.f32.mrb[19].mxu1 }
 0x28e   : > { %v2395_v1 = vadd.f32 %v2793_v58, %v2265_v39  ;;  %v2268_v55 = vadd.f32 %v4558_v4, %v2267_v57 }
 0x28f   : > { %v2741_v53 = vpack.c.bf16 %v2397_v38, %v2397_v38  ;;  %v2398_v7 = vadd.f32 %v2798_v13, %v2276_v17 }
 0x290   : > { %v2739_v51 = vpack.c.bf16 %v2395_v1, %v2395_v1  ;;  %v2396_v47 = vadd.f32 %v2794_v35, %v2268_v55 }
 0x291   : > { %2558 = vst.msk [vmem:[%s4568_s14 + $0x58] sm:$0xf] %vm2535_vm4, %v2741_v53  ;;  %v2742_v2 = vpack.c.bf16 %v2398_v7, %v2398_v7 }
 0x292   : > { %2556 = vst.msk [vmem:[%s4568_s14 + $0x50] sm:$0xf] %vm2535_vm4, %v2739_v51  ;;  %v2740_v48 = vpack.c.bf16 %v2396_v47, %v2396_v47 }
 0x293   : > { %2559 = vst.msk [vmem:[%s4568_s14 + $0x5c] sm:$0xf] %vm2535_vm4, %v2742_v2 }
 0x294   : > { %2557 = vst.msk [vmem:[%s4568_s14 + $0x54] sm:$0xf] %vm2535_vm4, %v2740_v48 }
 0x29c   : > { %v2947_v61 = vpop.f32.mrb[20].mxu1 }
 0x29d   : > { %v2289_v62 = vadd.f32 %v2947_v61, %v4558_v4  ;;  %v2280_v37 = vpop.f32.mrb[21].mxu1 }
 0x29e   : > { %v2281_v23 = vadd.f32 %v4558_v4, %v2280_v37  ;;  %v2948_v43 = vpop.f32.mrb[22].mxu1 }
 0x29f   : > { %v2401_v27 = vadd.f32 %v2805_v29, %v2289_v62  ;;  %v2292_v14 = vadd.f32 %v2948_v43, %v4558_v4  ;;  %v2283_v8 = vpop.f32.mrb[23].mxu1 }
 0x2a0   : > { %v2399_v63 = vadd.f32 %v2801_v49, %v2281_v23  ;;  %v2284_v31 = vadd.f32 %v4558_v4, %v2283_v8 }
 0x2a1   : > { %v2745_v60 = vpack.c.bf16 %v2401_v27, %v2401_v27  ;;  %v2402_v10 = vadd.f32 %v2806_v22, %v2292_v14 }
 0x2a2   : > { %v2743_v16 = vpack.c.bf16 %v2399_v63, %v2399_v63  ;;  %v2400_v46 = vadd.f32 %v2802_v25, %v2284_v31 }
 0x2a3   : > { %2562 = vst.msk [vmem:[%s4568_s14 + $0x68] sm:$0xf] %vm2535_vm4, %v2745_v60  ;;  %v2746_v21 = vpack.c.bf16 %v2402_v10, %v2402_v10 }
 0x2a4   : > { %2560 = vst.msk [vmem:[%s4568_s14 + $0x60] sm:$0xf] %vm2535_vm4, %v2743_v16  ;;  %v2744_v32 = vpack.c.bf16 %v2400_v46, %v2400_v46 }
 0x2a5   : > { %2563 = vst.msk [vmem:[%s4568_s14 + $0x6c] sm:$0xf] %vm2535_vm4, %v2746_v21 }
 0x2a6   : > { %2561 = vst.msk [vmem:[%s4568_s14 + $0x64] sm:$0xf] %vm2535_vm4, %v2744_v32 }
 0x2a8   : > { %v2951_v5 = vpop.f32.mrb[24].mxu1 }
 0x2a9   : > { %v2305_v3 = vadd.f32 %v2951_v5, %v4558_v4  ;;  %v2296_v40 = vpop.f32.mrb[25].mxu1 }
 0x2aa   : > { %v2297_v42 = vadd.f32 %v4558_v4, %v2296_v40  ;;  %v2952_v15 = vpop.f32.mrb[26].mxu1 }
 0x2ab   : > { %v2405_v30 = vadd.f32 %v2813_v19, %v2305_v3  ;;  %v2308_v24 = vadd.f32 %v2952_v15, %v4558_v4  ;;  %v2299_v33 = vpop.f32.mrb[27].mxu1 }
 0x2ac   : > { %v2403_v28 = vadd.f32 %v2809_v41, %v2297_v42  ;;  %v2300_v36 = vadd.f32 %v4558_v4, %v2299_v33 }
 0x2ad   : > { %v2749_v45 = vpack.c.bf16 %v2405_v30, %v2405_v30  ;;  %v2406_v56 = vadd.f32 %v2814_v26, %v2308_v24 }
 0x2ae   : > { %v2747_v0 = vpack.c.bf16 %v2403_v28, %v2403_v28  ;;  %v2404_v34 = vadd.f32 %v2810_v54, %v2300_v36 }
 0x2af   : > { %2566 = vst.msk [vmem:[%s4568_s14 + $0x78] sm:$0xf] %vm2535_vm4, %v2749_v45  ;;  %v2750_v52 = vpack.c.bf16 %v2406_v56, %v2406_v56 }
 0x2b0   : > { %2564 = vst.msk [vmem:[%s4568_s14 + $0x70] sm:$0xf] %vm2535_vm4, %v2747_v0  ;;  %v2748_v18 = vpack.c.bf16 %v2404_v34, %v2404_v34 }
 0x2b1   : > { %2567 = vst.msk [vmem:[%s4568_s14 + $0x7c] sm:$0xf] %vm2535_vm4, %v2750_v52 }
 0x2b2   : > { %2565 = vst.msk [vmem:[%s4568_s14 + $0x74] sm:$0xf] %vm2535_vm4, %v2748_v18 }
 0x2b3 PF: > { %s17_s24 = sadd.s32 1, %s3018_s24  }
 0x2b4   : > { %p14_p4 = scmp.ge.s32.totalorder %s17_s24, 4  }
 0x2b6   :  { %16 = sbr.rel (!%p14_p4) target bundleno = 1 (0x1), region = 81 }

</bundles_post_ra>
